<compile_context>
chip_gen: v6e
topology: v6e:2x2x1
jax: 0.10.0
libtpu: 0.0.40
codegen_flags: <defaults>
</compile_context>

<pallas_src>
import math
import numpy as np
import jax
import jax.numpy as jnp
from jax.experimental import pallas as pl
from jax.experimental.pallas import tpu as pltpu

# ---------------------------------------------------------------- config ----
CHW = (4, 16, 16)          # (C, H, W)
N_PATCHES = 4              # 16 % 4 == 0
N_BLOCKS = 2
HIDDEN_D = 8
N_HEADS = 2
OUT_D = 10
BATCH = 2

C, H, W = CHW
PS = H // N_PATCHES                      # patch size (square)
INPUT_D = C * PS * PS                    # flattened patch dim (64)
S = N_PATCHES * N_PATCHES                # number of patches (16)
SEQ = S + 1                              # +class token (17)
SEQ_PAD = ((SEQ + 7) // 8) * 8           # sublane-padded sequence length (24)
DH = HIDDEN_D // N_HEADS                 # per-head dim (4)
MLP_RATIO = 4
HID_MLP = MLP_RATIO * HIDDEN_D           # 32
EPS = 1e-5
NEG_INF = -1e30

# ------------------------------------------------------ packed slab layout --
LANES = 128
OUT_PAD = 128                                    # lane-dense output width
QKV_W = (2 + N_HEADS) * HIDDEN_D                 # Q(8) | K(8) | Vh0(8) | Vh1(8)

# W slab (bf16): matmul weights
R_WMAP = 0                                       # (INPUT_D, HIDDEN_D)
R_HW = R_WMAP + INPUT_D                          # (HIDDEN_D, OUT_PAD) head, 0-padded
R_WBLK = R_HW + HIDDEN_D                         # per-block weights start
BLK_W_ROWS = 2 * HIDDEN_D + HID_MLP              # wqkv(8) + w1(8) + w2(32)
W_ROWS = R_WBLK + N_BLOCKS * BLK_W_ROWS          # 168

# V slab (f32): biases / LN / masks / additive row table
R_ADD = 0                                        # (SEQ_PAD, HIDDEN_D) cls+pos+bias
R_KMASK = R_ADD + SEQ_PAD                        # (1, SEQ_PAD) pad-key mask
R_HB = R_KMASK + 1                               # (1, OUT_PAD) head bias, NEG_INF pad
R_VBLK = ((R_HB + 1 + 7) // 8) * 8               # per-block rows start (32)
BLK_V_ROWS = 8                                   # bqkv,b1,b2,ln1w,ln1b,ln2w,ln2b,pad
V_ROWS = R_VBLK + N_BLOCKS * BLK_V_ROWS          # 48


# -------------------------------------------------------------- parameters --
def get_positional_embeddings(seq_len, d):
    pe = np.ones((seq_len, d), dtype=np.float32)
    for i in range(seq_len):
        for j in range(d):
            if j % 2 == 0:
                pe[i, j] = np.sin(i / (10000 ** (j / d)))
            else:
                pe[i, j] = np.cos(i / (10000 ** ((j - 1) / d)))
    return jnp.asarray(pe)


def init_params(key):
    keys = iter(jax.random.split(key, 32))

    def nrm(shape, scale=0.1):
        return scale * jax.random.normal(next(keys), shape, dtype=jnp.float32)

    params = {
        # linear mapper (stored already transposed: (in, out) so x @ W + b)
        "wmap": nrm((INPUT_D, HIDDEN_D)),
        "bmap": nrm((1, HIDDEN_D)),
        "cls":  jax.random.uniform(next(keys), (1, HIDDEN_D), dtype=jnp.float32),
        "pos":  get_positional_embeddings(SEQ, HIDDEN_D),
        # layer norms (affine), one row per block
        "ln1w": jnp.ones((N_BLOCKS, HIDDEN_D), jnp.float32) + nrm((N_BLOCKS, HIDDEN_D), 0.01),
        "ln1b": nrm((N_BLOCKS, HIDDEN_D), 0.01),
        "ln2w": jnp.ones((N_BLOCKS, HIDDEN_D), jnp.float32) + nrm((N_BLOCKS, HIDDEN_D), 0.01),
        "ln2b": nrm((N_BLOCKS, HIDDEN_D), 0.01),
        # per-block, per-head QKV projections packed row-wise:
        #   rows [(blk*N_HEADS + h)*DH : +DH] hold head (blk, h)'s (DH, DH) matrix
        "qw": nrm((N_BLOCKS * N_HEADS * DH, DH)),
        "qb": nrm((N_BLOCKS * N_HEADS, DH)),
        "kw": nrm((N_BLOCKS * N_HEADS * DH, DH)),
        "kb": nrm((N_BLOCKS * N_HEADS, DH)),
        "vw": nrm((N_BLOCKS * N_HEADS * DH, DH)),
        "vb": nrm((N_BLOCKS * N_HEADS, DH)),
        # block MLPs packed row-wise
        "w1": nrm((N_BLOCKS * HIDDEN_D, HID_MLP)),
        "b1": nrm((N_BLOCKS, HID_MLP)),
        "w2": nrm((N_BLOCKS * HID_MLP, HIDDEN_D)),
        "b2": nrm((N_BLOCKS, HIDDEN_D)),
        # classification head
        "hw": nrm((HIDDEN_D, OUT_D)),
        "hb": nrm((1, OUT_D)),
    }
    return params


# --------------------------------------------------------- host repacking ---
def repack_params(params):
    """One-time host-side repacking (layout plumbing, no compute hoisting).

    W slab (bf16, (W_ROWS, 128)): patch mapper, fused per-block QKV
      (block-diagonal per head; 1/sqrt(DH) folded into Q; V split into one
      zero-padded 8-lane group per head so per-head attention outputs land in
      their own lanes and heads combine with a plain add), MLP w1/w2, and the
      classification head zero-padded to 128 lanes.
    V slab (f32, (V_ROWS, 128)): additive row table (class-token prepend +
      positional embedding + mapper bias on a SEQ_PAD-padded sequence), the
      pad-key attention mask, the head bias (NEG_INF on pad lanes), and
      per-block bias / LayerNorm rows."""
    f = lambda a: np.asarray(a, np.float32)
    scale = np.float32(1.0 / math.sqrt(DH))

    qw, qb = f(params["qw"]), f(params["qb"])
    kw, kb = f(params["kw"]), f(params["kb"])
    vw, vb = f(params["vw"]), f(params["vb"])

    wqkv = np.zeros((N_BLOCKS, HIDDEN_D, QKV_W), np.float32)
    bqkv = np.zeros((N_BLOCKS, QKV_W), np.float32)
    for blk in range(N_BLOCKS):
        for h in range(N_HEADS):
            r = blk * N_HEADS + h
            si = slice(h * DH, (h + 1) * DH)          # this head's input lanes
            # Q (scale folded), block-diagonal over heads, output lanes 0:D
            wqkv[blk, si, h * DH:(h + 1) * DH] = qw[r * DH:(r + 1) * DH] * scale
            bqkv[blk, h * DH:(h + 1) * DH] = qb[r] * scale
            # K, output lanes D:2D
            wqkv[blk, si, HIDDEN_D + h * DH:HIDDEN_D + (h + 1) * DH] = kw[r * DH:(r + 1) * DH]
            bqkv[blk, HIDDEN_D + h * DH:HIDDEN_D + (h + 1) * DH] = kb[r]
            # V: head h gets its own zero-padded D-lane group at 2D + h*D with
            # values at sub-lanes h*DH:(h+1)*DH, so p_h @ v_h already produces
            # the concatenated per-head layout and heads combine with an add.
            c0 = 2 * HIDDEN_D + h * HIDDEN_D + h * DH
            wqkv[blk, si, c0:c0 + DH] = vw[r * DH:(r + 1) * DH]
            bqkv[blk, c0:c0 + DH] = vb[r]

    Ws = np.zeros((W_ROWS, LANES), np.float32)
    Ws[R_WMAP:R_WMAP + INPUT_D, 0:HIDDEN_D] = f(params["wmap"])
    Ws[R_HW:R_HW + HIDDEN_D, 0:OUT_D] = f(params["hw"])
    w1 = f(params["w1"])
    w2 = f(params["w2"])
    for blk in range(N_BLOCKS):
        rw = R_WBLK + blk * BLK_W_ROWS
        Ws[rw:rw + HIDDEN_D, 0:QKV_W] = wqkv[blk]
        Ws[rw + HIDDEN_D:rw + 2 * HIDDEN_D, 0:HID_MLP] = w1[blk * HIDDEN_D:(blk + 1) * HIDDEN_D]
        Ws[rw + 2 * HIDDEN_D:rw + 2 * HIDDEN_D + HID_MLP, 0:HIDDEN_D] = \
            w2[blk * HID_MLP:(blk + 1) * HID_MLP]

    Vs = np.zeros((V_ROWS, LANES), np.float32)
    pos = f(params["pos"])
    # additive per-row table on the padded sequence:
    #   row 0          -> class token + pos[0]       (no mapper bias)
    #   rows 1..SEQ-1  -> mapper bias + pos[i]
    #   rows SEQ..     -> 0 (pad)
    Vs[R_ADD, 0:HIDDEN_D] = f(params["cls"])[0] + pos[0]
    Vs[R_ADD + 1:R_ADD + SEQ, 0:HIDDEN_D] = f(params["bmap"])[0] + pos[1:SEQ]
    Vs[R_KMASK, SEQ:SEQ_PAD] = NEG_INF                     # pad keys masked
    Vs[R_HB, 0:OUT_D] = f(params["hb"])[0]
    Vs[R_HB, OUT_D:] = NEG_INF                             # pad logit lanes -> 0 prob
    for blk in range(N_BLOCKS):
        rv = R_VBLK + blk * BLK_V_ROWS
        Vs[rv + 0, 0:QKV_W] = bqkv[blk]
        Vs[rv + 1, 0:HID_MLP] = f(params["b1"])[blk]
        Vs[rv + 2, 0:HIDDEN_D] = f(params["b2"])[blk]
        Vs[rv + 3, 0:HIDDEN_D] = f(params["ln1w"])[blk]
        Vs[rv + 4, 0:HIDDEN_D] = f(params["ln1b"])[blk]
        Vs[rv + 5, 0:HIDDEN_D] = f(params["ln2w"])[blk]
        Vs[rv + 6, 0:HIDDEN_D] = f(params["ln2b"])[blk]

    return {"w": jnp.asarray(Ws, jnp.bfloat16), "v": jnp.asarray(Vs, jnp.float32)}


# ------------------------------------------------------------------ kernel --
def _layernorm(x, w, b):
    mu = jnp.mean(x, axis=-1, keepdims=True)
    var = jnp.mean((x - mu) ** 2, axis=-1, keepdims=True)
    return (x - mu) * jax.lax.rsqrt(var + EPS) * w + b


def _softmax(logits):
    # explicit softmax: the divide becomes an EUP approx reciprocal.
    m = jnp.max(logits, axis=-1, keepdims=True)
    e = jnp.exp(logits - m)
    s = jnp.sum(e, axis=-1, keepdims=True)
    return e * pl.reciprocal(s, approx=True)


def vit_kernel(patch_ref, w_ref, v_ref, out_ref):
    bt = patch_ref.shape[0]                       # batch elements in this step
    rows = bt * SEQ_PAD
    bf16 = jnp.bfloat16

    # ---- patch mapper over the whole batch tile (one MXU push) -------------
    wmap = w_ref[R_WMAP:R_WMAP + INPUT_D, 0:HIDDEN_D]            # (64,8) bf16
    add = v_ref[R_ADD:R_ADD + SEQ_PAD, 0:HIDDEN_D]               # (24,8) f32
    patches = patch_ref[...].reshape(rows, INPUT_D)              # bf16
    x = jnp.dot(patches, wmap, preferred_element_type=jnp.float32)
    # class token, positional embedding and mapper bias arrive via `add`.
    x = (x.reshape(bt, SEQ_PAD, HIDDEN_D) + add[None]).reshape(rows, HIDDEN_D)

    # pad-key additive mask broadcast ONCE to the logits shape (hoisted: JAX
    # does not CSE broadcast_in_dim).
    kmask = v_ref[R_KMASK:R_KMASK + 1, 0:SEQ_PAD]                # (1,24) f32
    kmask_b = jnp.broadcast_to(kmask.reshape(1, 1, SEQ_PAD),
                               (bt, SEQ_PAD, SEQ_PAD))

    for blk in range(N_BLOCKS):
        rw = R_WBLK + blk * BLK_W_ROWS
        rv = R_VBLK + blk * BLK_V_ROWS
        wqkv = w_ref[rw:rw + HIDDEN_D, 0:QKV_W]                              # (8,32) bf16
        w1 = w_ref[rw + HIDDEN_D:rw + 2 * HIDDEN_D, 0:HID_MLP]               # (8,32) bf16
        w2 = w_ref[rw + 2 * HIDDEN_D:rw + 2 * HIDDEN_D + HID_MLP, 0:HIDDEN_D]  # (32,8)
        bqkv = v_ref[rv + 0:rv + 1, 0:QKV_W]
        b1 = v_ref[rv + 1:rv + 2, 0:HID_MLP]
        b2 = v_ref[rv + 2:rv + 3, 0:HIDDEN_D]
        ln1w = v_ref[rv + 3:rv + 4, 0:HIDDEN_D]
        ln1b = v_ref[rv + 4:rv + 5, 0:HIDDEN_D]
        ln2w = v_ref[rv + 5:rv + 6, 0:HIDDEN_D]
        ln2b = v_ref[rv + 6:rv + 7, 0:HIDDEN_D]

        # ---- MHSA: one fused QKV matmul per block (1/sqrt(DH) folded in Q) --
        xn = _layernorm(x, ln1w, ln1b)
        qkv = jnp.dot(xn.astype(bf16), wqkv,
                      preferred_element_type=jnp.float32) + bqkv             # (rows,32)
        qkv3 = qkv.reshape(bt, SEQ_PAD, QKV_W)

        attn = None
        for h in range(N_HEADS):
            qh = qkv3[..., h * DH:(h + 1) * DH]                              # (bt,24,4)
            kh = qkv3[..., HIDDEN_D + h * DH:HIDDEN_D + (h + 1) * DH]        # (bt,24,4)
            vh = qkv3[..., 2 * HIDDEN_D + h * HIDDEN_D:
                      2 * HIDDEN_D + (h + 1) * HIDDEN_D]                     # (bt,24,8)
            logits = jnp.einsum("bqd,bkd->bqk",
                                qh.astype(bf16), kh.astype(bf16),
                                preferred_element_type=jnp.float32) + kmask_b
            p = _softmax(logits)
            # vh is zero outside head h's lanes -> per-head outputs land in
            # their own lanes; heads combine with a plain add (no concat, no
            # lane masks).
            o = jnp.einsum("bqk,bkd->bqd",
                           p.astype(bf16), vh.astype(bf16),
                           preferred_element_type=jnp.float32)
            attn = o if attn is None else attn + o
        x = x + attn.reshape(rows, HIDDEN_D)

        # ---- MLP -------------------------------------------------------------
        xn2 = _layernorm(x, ln2w, ln2b)
        hdn = jnp.dot(xn2.astype(bf16), w1,
                      preferred_element_type=jnp.float32) + b1
        # TODO(synk): torch nn.GELU() default is exact erf-GELU; tanh approximation used here.
        hdn = jax.nn.gelu(hdn, approximate=True)
        x = x + jnp.dot(hdn.astype(bf16), w2,
                        preferred_element_type=jnp.float32) + b2

    # ---- classification head on class-token rows; lane-dense (bt,128) store -
    hw = w_ref[R_HW:R_HW + HIDDEN_D, :]                # (8,128) bf16, zero-padded
    hb = v_ref[R_HB:R_HB + 1, :]                       # (1,128) f32, NEG_INF pad lanes
    cls = x.reshape(bt, SEQ_PAD, HIDDEN_D)[:, 0:1, :].reshape(bt, HIDDEN_D)
    logits = jnp.dot(cls.astype(bf16), hw,
                     preferred_element_type=jnp.float32) + hb
    out_ref[...] = _softmax(logits).reshape(1, bt, OUT_PAD)


# ----------------------------------------------------------------- wrapper --
def patchify(images):
    # images: (N, C, H, W); matches the torch patchify flatten order (C, ph, pw)
    n = images.shape[0]
    p = images.reshape(n, C, N_PATCHES, PS, N_PATCHES, PS)
    p = p.transpose(0, 2, 4, 1, 3, 5)            # (n, np_i, np_j, C, ps, ps)
    return p.reshape(n, S, INPUT_D).astype(jnp.float32)


def _pick_tiling(n):
    # v7x has two TensorCores: the "parallel" batch grid axis only helps if
    # there are >= 2 grid steps, so split the batch in two when possible.
    # On single-TC v5e/v6e the extra step costs ~0.35us (negligible here).
    num_steps = 2 if n >= 2 else 1
    b_tile = -(-n // num_steps)
    # TODO(synk): for large batches on v5e/v6e raise b_tile so that
    # b_tile*SEQ_PAD >= 128 / 256 (MXU row fill) while keeping few grid steps;
    # VMEM is never the constraint at this model size on any generation.
    return num_steps, b_tile


def vit_forward(images, w_slab, v_slab):
    n = images.shape[0]
    num_steps, b_tile = _pick_tiling(n)
    n_pad = num_steps * b_tile

    patches = patchify(images).astype(jnp.bfloat16)        # (n, S, INPUT_D)
    # Padded sequence layout: row 0 is the class-token slot (zeros -> mapper
    # contributes nothing there), rows SEQ..SEQ_PAD-1 are zero pad that the
    # kernel masks out of attention.
    patches_pad = jnp.zeros((n_pad, SEQ_PAD, INPUT_D), jnp.bfloat16)
    patches_pad = patches_pad.at[:n, 1:SEQ, :].set(patches)

    out = pl.pallas_call(
        vit_kernel,
        out_shape=jax.ShapeDtypeStruct((num_steps, b_tile, OUT_PAD), jnp.float32),
        grid=(num_steps,),
        in_specs=[
            pl.BlockSpec((b_tile, SEQ_PAD, INPUT_D), lambda i: (i, 0, 0)),
            pl.BlockSpec((W_ROWS, LANES), lambda i: (0, 0)),   # constant: fetched once
            pl.BlockSpec((V_ROWS, LANES), lambda i: (0, 0)),   # constant: fetched once
        ],
        out_specs=pl.BlockSpec((1, b_tile, OUT_PAD), lambda i: (i, 0, 0)),
        compiler_params=pltpu.CompilerParams(
            dimension_semantics=("parallel",)),
    )(patches_pad, w_slab, v_slab)
    return out.reshape(n_pad, OUT_PAD)[:n, :OUT_D]


# --------------------------------------------------- pure-JAX reference -----
def vit_ref(images, params):
    n = images.shape[0]
    patches = patchify(images)
    tokens = patches @ params["wmap"] + params["bmap"]
    cls = jnp.broadcast_to(params["cls"], (n, 1, HIDDEN_D))
    x = jnp.concatenate([cls, tokens], axis=1) + params["pos"]

    def ln(x, w, b):
        mu = x.mean(-1, keepdims=True)
        var = ((x - mu) ** 2).mean(-1, keepdims=True)
        return (x - mu) / jnp.sqrt(var + EPS) * w + b

    for blk in range(N_BLOCKS):
        xn = ln(x, params["ln1w"][blk], params["ln1b"][blk])
        heads = []
        for h in range(N_HEADS):
            r = blk * N_HEADS + h
            seq = xn[..., h * DH:(h + 1) * DH]
            q = seq @ params["qw"][r * DH:(r + 1) * DH] + params["qb"][r]
            k = seq @ params["kw"][r * DH:(r + 1) * DH] + params["kb"][r]
            v = seq @ params["vw"][r * DH:(r + 1) * DH] + params["vb"][r]
            att = jax.nn.softmax(q @ jnp.swapaxes(k, -1, -2) / math.sqrt(DH), axis=-1)
            heads.append(att @ v)
        x = x + jnp.concatenate(heads, axis=-1)
        xn2 = ln(x, params["ln2w"][blk], params["ln2b"][blk])
        hdn = jax.nn.gelu(
            xn2 @ params["w1"][blk * HIDDEN_D:(blk + 1) * HIDDEN_D] + params["b1"][blk],
            approximate=True)
        x = x + hdn @ params["w2"][blk * HID_MLP:(blk + 1) * HID_MLP] + params["b2"][blk]
    logits = x[:, 0] @ params["hw"] + params["hb"]
    return jax.nn.softmax(logits, axis=-1)


# -------------------------------------------------------------------- main --
if __name__ == "__main__":
    key = jax.random.PRNGKey(0)
    pkey, xkey = jax.random.split(key)
    params = init_params(pkey)
    images = jax.random.normal(xkey, (BATCH, C, H, W), dtype=jnp.float32)

    slabs = repack_params(params)          # host-side, ONCE (not per call)
    forward = jax.jit(vit_forward)

    out = forward(images, slabs["w"], slabs["v"])
    out = jax.block_until_ready(out)

    assert out.shape == (BATCH, OUT_D)
    assert bool(jnp.all(jnp.isfinite(out)))

    ref = jax.block_until_ready(vit_ref(images, params))
    np.testing.assert_allclose(np.asarray(out), np.asarray(ref), atol=2e-2, rtol=2e-2)

    print("KERNEL_OK")
</pallas_src>

<mosaic_0001>
module attributes {stable_mosaic.version = 11 : i64} {
  func.func @vit_kernel(%arg0: i32, %arg1: memref<1x24x64xbf16, #tpu.memory_space<vmem>>, %arg2: memref<168x128xbf16, #tpu.memory_space<vmem>>, %arg3: memref<48x128xf32, #tpu.memory_space<vmem>>, %arg4: memref<1x1x128xf32, #tpu.memory_space<vmem>>) attributes {dimension_semantics = [#tpu.dimension_semantics<parallel>], iteration_bounds = array<i64: 2>, scalar_prefetch = 0 : i64, scratch_operands = 0 : i64, tpu.core_type = #tpu.core_type<tc>, window_params = [{transform_indices = @transform_0, window_bounds = array<i64: 1, 24, 64>}, {pipeline_mode = #tpu.pipeline_mode<synchronous>, transform_indices = @transform_1, window_bounds = array<i64: 168, 128>}, {pipeline_mode = #tpu.pipeline_mode<synchronous>, transform_indices = @transform_2, window_bounds = array<i64: 48, 128>}, {transform_indices = @transform_3, window_bounds = array<i64: 1, 1, 128>}]} {
    %c0 = arith.constant 0 : index
    %c0_0 = arith.constant 0 : index
    %0 = vector.load %arg2[%c0, %c0_0] : memref<168x128xbf16, #tpu.memory_space<vmem>>, vector<64x8xbf16>
    %c0_1 = arith.constant 0 : index
    %c0_2 = arith.constant 0 : index
    %1 = vector.load %arg3[%c0_1, %c0_2] : memref<48x128xf32, #tpu.memory_space<vmem>>, vector<24x8xf32>
    %c0_3 = arith.constant 0 : index
    %c0_4 = arith.constant 0 : index
    %c0_5 = arith.constant 0 : index
    %2 = vector.load %arg1[%c0_3, %c0_4, %c0_5] : memref<1x24x64xbf16, #tpu.memory_space<vmem>>, vector<1x24x64xbf16>
    %3 = vector.shape_cast %2 : vector<1x24x64xbf16> to vector<24x64xbf16>
    %cst = arith.constant dense<0.000000e+00> : vector<24x8xf32>
    %4 = tpu.matmul %3, %0, %cst {dimension_numbers = #tpu.dot_dimension_numbers<[1], [0], [0], [1], [0, 0, 1, 1], [], []>} : vector<24x64xbf16>, vector<64x8xbf16>, vector<24x8xf32> -> vector<24x8xf32>
    %5 = vector.shape_cast %4 : vector<24x8xf32> to vector<1x24x8xf32>
    %6 = vector.shape_cast %1 : vector<24x8xf32> to vector<1x24x8xf32>
    %7 = arith.addf %5, %6 : vector<1x24x8xf32>
    %8 = vector.shape_cast %7 : vector<1x24x8xf32> to vector<24x8xf32>
    %c24 = arith.constant 24 : index
    %c0_6 = arith.constant 0 : index
    %9 = vector.load %arg3[%c24, %c0_6] : memref<48x128xf32, #tpu.memory_space<vmem>>, vector<1x24xf32>
    %10 = vector.shape_cast %9 : vector<1x24xf32> to vector<1x1x24xf32>
    %11 = vector.shape_cast %10 : vector<1x1x24xf32> to vector<1x1x24xf32>
    %12 = vector.broadcast %11 : vector<1x1x24xf32> to vector<1x24x24xf32>
    %c72 = arith.constant 72 : index
    %c0_7 = arith.constant 0 : index
    %13 = vector.load %arg2[%c72, %c0_7] : memref<168x128xbf16, #tpu.memory_space<vmem>>, vector<8x32xbf16>
    %c80 = arith.constant 80 : index
    %c0_8 = arith.constant 0 : index
    %14 = vector.load %arg2[%c80, %c0_8] : memref<168x128xbf16, #tpu.memory_space<vmem>>, vector<8x32xbf16>
    %c88 = arith.constant 88 : index
    %c0_9 = arith.constant 0 : index
    %15 = vector.load %arg2[%c88, %c0_9] : memref<168x128xbf16, #tpu.memory_space<vmem>>, vector<32x8xbf16>
    %c32 = arith.constant 32 : index
    %c0_10 = arith.constant 0 : index
    %16 = vector.load %arg3[%c32, %c0_10] : memref<48x128xf32, #tpu.memory_space<vmem>>, vector<1x32xf32>
    %c33 = arith.constant 33 : index
    %c0_11 = arith.constant 0 : index
    %17 = vector.load %arg3[%c33, %c0_11] : memref<48x128xf32, #tpu.memory_space<vmem>>, vector<1x32xf32>
    %c34 = arith.constant 34 : index
    %c0_12 = arith.constant 0 : index
    %18 = vector.load %arg3[%c34, %c0_12] : memref<48x128xf32, #tpu.memory_space<vmem>>, vector<1x8xf32>
    %c35 = arith.constant 35 : index
    %c0_13 = arith.constant 0 : index
    %19 = vector.load %arg3[%c35, %c0_13] : memref<48x128xf32, #tpu.memory_space<vmem>>, vector<1x8xf32>
    %c36 = arith.constant 36 : index
    %c0_14 = arith.constant 0 : index
    %20 = vector.load %arg3[%c36, %c0_14] : memref<48x128xf32, #tpu.memory_space<vmem>>, vector<1x8xf32>
    %c37 = arith.constant 37 : index
    %c0_15 = arith.constant 0 : index
    %21 = vector.load %arg3[%c37, %c0_15] : memref<48x128xf32, #tpu.memory_space<vmem>>, vector<1x8xf32>
    %c38 = arith.constant 38 : index
    %c0_16 = arith.constant 0 : index
    %22 = vector.load %arg3[%c38, %c0_16] : memref<48x128xf32, #tpu.memory_space<vmem>>, vector<1x8xf32>
    %cst_17 = arith.constant dense<0.000000e+00> : vector<24xf32>
    %23 = vector.multi_reduction <add>, %8, %cst_17 [1] : vector<24x8xf32> to vector<24xf32>
    %24 = vector.shape_cast %23 : vector<24xf32> to vector<24x1xf32>
    %cst_18 = arith.constant 8.000000e+00 : f32
    %25 = vector.broadcast %cst_18 : f32 to vector<24x1xf32>
    %26 = arith.divf %24, %25 : vector<24x1xf32>
    %27 = vector.broadcast %26 : vector<24x1xf32> to vector<24x8xf32>
    %28 = arith.subf %8, %27 : vector<24x8xf32>
    %29 = arith.mulf %28, %28 : vector<24x8xf32>
    %cst_19 = arith.constant dense<0.000000e+00> : vector<24xf32>
    %30 = vector.multi_reduction <add>, %29, %cst_19 [1] : vector<24x8xf32> to vector<24xf32>
    %31 = vector.shape_cast %30 : vector<24xf32> to vector<24x1xf32>
    %cst_20 = arith.constant 8.000000e+00 : f32
    %32 = vector.broadcast %cst_20 : f32 to vector<24x1xf32>
    %33 = arith.divf %31, %32 : vector<24x1xf32>
    %34 = vector.broadcast %26 : vector<24x1xf32> to vector<24x8xf32>
    %35 = arith.subf %8, %34 : vector<24x8xf32>
    %cst_21 = arith.constant 9.99999974E-6 : f32
    %36 = vector.broadcast %cst_21 : f32 to vector<24x1xf32>
    %37 = arith.addf %33, %36 : vector<24x1xf32>
    %38 = math.rsqrt %37 : vector<24x1xf32>
    %39 = vector.broadcast %38 : vector<24x1xf32> to vector<24x8xf32>
    %40 = arith.mulf %35, %39 : vector<24x8xf32>
    %41 = vector.broadcast %19 : vector<1x8xf32> to vector<24x8xf32>
    %42 = arith.mulf %40, %41 : vector<24x8xf32>
    %43 = vector.broadcast %20 : vector<1x8xf32> to vector<24x8xf32>
    %44 = arith.addf %42, %43 : vector<24x8xf32>
    %45 = arith.truncf %44 : vector<24x8xf32> to vector<24x8xbf16>
    %cst_22 = arith.constant dense<0.000000e+00> : vector<24x32xf32>
    %46 = tpu.matmul %45, %13, %cst_22 {dimension_numbers = #tpu.dot_dimension_numbers<[1], [0], [0], [1], [0, 0, 1, 1], [], []>} : vector<24x8xbf16>, vector<8x32xbf16>, vector<24x32xf32> -> vector<24x32xf32>
    %47 = vector.broadcast %16 : vector<1x32xf32> to vector<24x32xf32>
    %48 = arith.addf %46, %47 : vector<24x32xf32>
    %49 = vector.shape_cast %48 : vector<24x32xf32> to vector<1x24x32xf32>
    %50 = vector.extract_strided_slice %49 {offsets = [0, 0, 0], sizes = [1, 24, 4], strides = [1, 1, 1]} : vector<1x24x32xf32> to vector<1x24x4xf32>
    %51 = vector.extract_strided_slice %49 {offsets = [0, 0, 8], sizes = [1, 24, 4], strides = [1, 1, 1]} : vector<1x24x32xf32> to vector<1x24x4xf32>
    %52 = vector.extract_strided_slice %49 {offsets = [0, 0, 16], sizes = [1, 24, 8], strides = [1, 1, 1]} : vector<1x24x32xf32> to vector<1x24x8xf32>
    %53 = arith.truncf %50 : vector<1x24x4xf32> to vector<1x24x4xbf16>
    %54 = arith.truncf %51 : vector<1x24x4xf32> to vector<1x24x4xbf16>
    "tpu.trace_start"() <{level = 10 : i32, message = "bqd,bkd->bqk"}> : () -> ()
    %cst_23 = arith.constant dense<0.000000e+00> : vector<1x24x24xf32>
    %55 = tpu.matmul %53, %54, %cst_23 {dimension_numbers = #tpu.dot_dimension_numbers<[2], [2], [1], [1], [0, 0, 0, 1, 1, 1], [0], [0]>} : vector<1x24x4xbf16>, vector<1x24x4xbf16>, vector<1x24x24xf32> -> vector<1x24x24xf32>
    "tpu.trace_stop"() : () -> ()
    %56 = arith.addf %55, %12 : vector<1x24x24xf32>
    %cst_24 = arith.constant dense<0xFF800000> : vector<1x24xf32>
    %57 = vector.multi_reduction <maximumf>, %56, %cst_24 [2] : vector<1x24x24xf32> to vector<1x24xf32>
    %58 = vector.shape_cast %57 : vector<1x24xf32> to vector<1x24x1xf32>
    %59 = vector.broadcast %58 : vector<1x24x1xf32> to vector<1x24x24xf32>
    %60 = arith.subf %56, %59 : vector<1x24x24xf32>
    %61 = math.exp %60 : vector<1x24x24xf32>
    %cst_25 = arith.constant dense<0.000000e+00> : vector<1x24xf32>
    %62 = vector.multi_reduction <add>, %61, %cst_25 [2] : vector<1x24x24xf32> to vector<1x24xf32>
    %63 = vector.shape_cast %62 : vector<1x24xf32> to vector<1x24x1xf32>
    %64 = tpu.reciprocal %63 {approx = true} : vector<1x24x1xf32> -> vector<1x24x1xf32>
    %65 = vector.broadcast %64 : vector<1x24x1xf32> to vector<1x24x24xf32>
    %66 = arith.mulf %61, %65 : vector<1x24x24xf32>
    %67 = arith.truncf %66 : vector<1x24x24xf32> to vector<1x24x24xbf16>
    %68 = arith.truncf %52 : vector<1x24x8xf32> to vector<1x24x8xbf16>
    "tpu.trace_start"() <{level = 10 : i32, message = "bqk,bkd->bqd"}> : () -> ()
    %cst_26 = arith.constant dense<0.000000e+00> : vector<1x24x8xf32>
    %69 = tpu.matmul %67, %68, %cst_26 {dimension_numbers = #tpu.dot_dimension_numbers<[2], [1], [1], [2], [0, 0, 0, 1, 1, 2], [0], [0]>} : vector<1x24x24xbf16>, vector<1x24x8xbf16>, vector<1x24x8xf32> -> vector<1x24x8xf32>
    "tpu.trace_stop"() : () -> ()
    %70 = vector.extract_strided_slice %49 {offsets = [0, 0, 4], sizes = [1, 24, 4], strides = [1, 1, 1]} : vector<1x24x32xf32> to vector<1x24x4xf32>
    %71 = vector.extract_strided_slice %49 {offsets = [0, 0, 12], sizes = [1, 24, 4], strides = [1, 1, 1]} : vector<1x24x32xf32> to vector<1x24x4xf32>
    %72 = vector.extract_strided_slice %49 {offsets = [0, 0, 24], sizes = [1, 24, 8], strides = [1, 1, 1]} : vector<1x24x32xf32> to vector<1x24x8xf32>
    %73 = arith.truncf %70 : vector<1x24x4xf32> to vector<1x24x4xbf16>
    %74 = arith.truncf %71 : vector<1x24x4xf32> to vector<1x24x4xbf16>
    "tpu.trace_start"() <{level = 10 : i32, message = "bqd,bkd->bqk"}> : () -> ()
    %cst_27 = arith.constant dense<0.000000e+00> : vector<1x24x24xf32>
    %75 = tpu.matmul %73, %74, %cst_27 {dimension_numbers = #tpu.dot_dimension_numbers<[2], [2], [1], [1], [0, 0, 0, 1, 1, 1], [0], [0]>} : vector<1x24x4xbf16>, vector<1x24x4xbf16>, vector<1x24x24xf32> -> vector<1x24x24xf32>
    "tpu.trace_stop"() : () -> ()
    %76 = arith.addf %75, %12 : vector<1x24x24xf32>
    %cst_28 = arith.constant dense<0xFF800000> : vector<1x24xf32>
    %77 = vector.multi_reduction <maximumf>, %76, %cst_28 [2] : vector<1x24x24xf32> to vector<1x24xf32>
    %78 = vector.shape_cast %77 : vector<1x24xf32> to vector<1x24x1xf32>
    %79 = vector.broadcast %78 : vector<1x24x1xf32> to vector<1x24x24xf32>
    %80 = arith.subf %76, %79 : vector<1x24x24xf32>
    %81 = math.exp %80 : vector<1x24x24xf32>
    %cst_29 = arith.constant dense<0.000000e+00> : vector<1x24xf32>
    %82 = vector.multi_reduction <add>, %81, %cst_29 [2] : vector<1x24x24xf32> to vector<1x24xf32>
    %83 = vector.shape_cast %82 : vector<1x24xf32> to vector<1x24x1xf32>
    %84 = tpu.reciprocal %83 {approx = true} : vector<1x24x1xf32> -> vector<1x24x1xf32>
    %85 = vector.broadcast %84 : vector<1x24x1xf32> to vector<1x24x24xf32>
    %86 = arith.mulf %81, %85 : vector<1x24x24xf32>
    %87 = arith.truncf %86 : vector<1x24x24xf32> to vector<1x24x24xbf16>
    %88 = arith.truncf %72 : vector<1x24x8xf32> to vector<1x24x8xbf16>
    "tpu.trace_start"() <{level = 10 : i32, message = "bqk,bkd->bqd"}> : () -> ()
    %cst_30 = arith.constant dense<0.000000e+00> : vector<1x24x8xf32>
    %89 = tpu.matmul %87, %88, %cst_30 {dimension_numbers = #tpu.dot_dimension_numbers<[2], [1], [1], [2], [0, 0, 0, 1, 1, 2], [0], [0]>} : vector<1x24x24xbf16>, vector<1x24x8xbf16>, vector<1x24x8xf32> -> vector<1x24x8xf32>
    "tpu.trace_stop"() : () -> ()
    %90 = arith.addf %69, %89 : vector<1x24x8xf32>
    %91 = vector.shape_cast %90 : vector<1x24x8xf32> to vector<24x8xf32>
    %92 = arith.addf %8, %91 : vector<24x8xf32>
    %cst_31 = arith.constant dense<0.000000e+00> : vector<24xf32>
    %93 = vector.multi_reduction <add>, %92, %cst_31 [1] : vector<24x8xf32> to vector<24xf32>
    %94 = vector.shape_cast %93 : vector<24xf32> to vector<24x1xf32>
    %cst_32 = arith.constant 8.000000e+00 : f32
    %95 = vector.broadcast %cst_32 : f32 to vector<24x1xf32>
    %96 = arith.divf %94, %95 : vector<24x1xf32>
    %97 = vector.broadcast %96 : vector<24x1xf32> to vector<24x8xf32>
    %98 = arith.subf %92, %97 : vector<24x8xf32>
    %99 = arith.mulf %98, %98 : vector<24x8xf32>
    %cst_33 = arith.constant dense<0.000000e+00> : vector<24xf32>
    %100 = vector.multi_reduction <add>, %99, %cst_33 [1] : vector<24x8xf32> to vector<24xf32>
    %101 = vector.shape_cast %100 : vector<24xf32> to vector<24x1xf32>
    %cst_34 = arith.constant 8.000000e+00 : f32
    %102 = vector.broadcast %cst_34 : f32 to vector<24x1xf32>
    %103 = arith.divf %101, %102 : vector<24x1xf32>
    %104 = vector.broadcast %96 : vector<24x1xf32> to vector<24x8xf32>
    %105 = arith.subf %92, %104 : vector<24x8xf32>
    %cst_35 = arith.constant 9.99999974E-6 : f32
    %106 = vector.broadcast %cst_35 : f32 to vector<24x1xf32>
    %107 = arith.addf %103, %106 : vector<24x1xf32>
    %108 = math.rsqrt %107 : vector<24x1xf32>
    %109 = vector.broadcast %108 : vector<24x1xf32> to vector<24x8xf32>
    %110 = arith.mulf %105, %109 : vector<24x8xf32>
    %111 = vector.broadcast %21 : vector<1x8xf32> to vector<24x8xf32>
    %112 = arith.mulf %110, %111 : vector<24x8xf32>
    %113 = vector.broadcast %22 : vector<1x8xf32> to vector<24x8xf32>
    %114 = arith.addf %112, %113 : vector<24x8xf32>
    %115 = arith.truncf %114 : vector<24x8xf32> to vector<24x8xbf16>
    %cst_36 = arith.constant dense<0.000000e+00> : vector<24x32xf32>
    %116 = tpu.matmul %115, %14, %cst_36 {dimension_numbers = #tpu.dot_dimension_numbers<[1], [0], [0], [1], [0, 0, 1, 1], [], []>} : vector<24x8xbf16>, vector<8x32xbf16>, vector<24x32xf32> -> vector<24x32xf32>
    %117 = vector.broadcast %17 : vector<1x32xf32> to vector<24x32xf32>
    %118 = arith.addf %116, %117 : vector<24x32xf32>
    %119 = arith.mulf %118, %118 : vector<24x32xf32>
    %120 = arith.mulf %118, %119 : vector<24x32xf32>
    %cst_37 = arith.constant 4.471500e-02 : f32
    %121 = vector.broadcast %cst_37 : f32 to vector<24x32xf32>
    %122 = arith.mulf %121, %120 : vector<24x32xf32>
    %123 = arith.addf %118, %122 : vector<24x32xf32>
    %cst_38 = arith.constant 0.797884583 : f32
    %124 = vector.broadcast %cst_38 : f32 to vector<24x32xf32>
    %125 = arith.mulf %124, %123 : vector<24x32xf32>
    %126 = math.tanh %125 : vector<24x32xf32>
    %cst_39 = arith.constant 1.000000e+00 : f32
    %127 = vector.broadcast %cst_39 : f32 to vector<24x32xf32>
    %128 = arith.addf %127, %126 : vector<24x32xf32>
    %cst_40 = arith.constant 5.000000e-01 : f32
    %129 = vector.broadcast %cst_40 : f32 to vector<24x32xf32>
    %130 = arith.mulf %129, %128 : vector<24x32xf32>
    %131 = arith.mulf %118, %130 : vector<24x32xf32>
    %132 = arith.truncf %131 : vector<24x32xf32> to vector<24x32xbf16>
    %cst_41 = arith.constant dense<0.000000e+00> : vector<24x8xf32>
    %133 = tpu.matmul %132, %15, %cst_41 {dimension_numbers = #tpu.dot_dimension_numbers<[1], [0], [0], [1], [0, 0, 1, 1], [], []>} : vector<24x32xbf16>, vector<32x8xbf16>, vector<24x8xf32> -> vector<24x8xf32>
    %134 = arith.addf %92, %133 : vector<24x8xf32>
    %135 = vector.broadcast %18 : vector<1x8xf32> to vector<24x8xf32>
    %136 = arith.addf %134, %135 : vector<24x8xf32>
    %c120 = arith.constant 120 : index
    %c0_42 = arith.constant 0 : index
    %137 = vector.load %arg2[%c120, %c0_42] : memref<168x128xbf16, #tpu.memory_space<vmem>>, vector<8x32xbf16>
    %c128 = arith.constant 128 : index
    %c0_43 = arith.constant 0 : index
    %138 = vector.load %arg2[%c128, %c0_43] : memref<168x128xbf16, #tpu.memory_space<vmem>>, vector<8x32xbf16>
    %c136 = arith.constant 136 : index
    %c0_44 = arith.constant 0 : index
    %139 = vector.load %arg2[%c136, %c0_44] : memref<168x128xbf16, #tpu.memory_space<vmem>>, vector<32x8xbf16>
    %c40 = arith.constant 40 : index
    %c0_45 = arith.constant 0 : index
    %140 = vector.load %arg3[%c40, %c0_45] : memref<48x128xf32, #tpu.memory_space<vmem>>, vector<1x32xf32>
    %c41 = arith.constant 41 : index
    %c0_46 = arith.constant 0 : index
    %141 = vector.load %arg3[%c41, %c0_46] : memref<48x128xf32, #tpu.memory_space<vmem>>, vector<1x32xf32>
    %c42 = arith.constant 42 : index
    %c0_47 = arith.constant 0 : index
    %142 = vector.load %arg3[%c42, %c0_47] : memref<48x128xf32, #tpu.memory_space<vmem>>, vector<1x8xf32>
    %c43 = arith.constant 43 : index
    %c0_48 = arith.constant 0 : index
    %143 = vector.load %arg3[%c43, %c0_48] : memref<48x128xf32, #tpu.memory_space<vmem>>, vector<1x8xf32>
    %c44 = arith.constant 44 : index
    %c0_49 = arith.constant 0 : index
    %144 = vector.load %arg3[%c44, %c0_49] : memref<48x128xf32, #tpu.memory_space<vmem>>, vector<1x8xf32>
    %c45 = arith.constant 45 : index
    %c0_50 = arith.constant 0 : index
    %145 = vector.load %arg3[%c45, %c0_50] : memref<48x128xf32, #tpu.memory_space<vmem>>, vector<1x8xf32>
    %c46 = arith.constant 46 : index
    %c0_51 = arith.constant 0 : index
    %146 = vector.load %arg3[%c46, %c0_51] : memref<48x128xf32, #tpu.memory_space<vmem>>, vector<1x8xf32>
    %cst_52 = arith.constant dense<0.000000e+00> : vector<24xf32>
    %147 = vector.multi_reduction <add>, %136, %cst_52 [1] : vector<24x8xf32> to vector<24xf32>
    %148 = vector.shape_cast %147 : vector<24xf32> to vector<24x1xf32>
    %cst_53 = arith.constant 8.000000e+00 : f32
    %149 = vector.broadcast %cst_53 : f32 to vector<24x1xf32>
    %150 = arith.divf %148, %149 : vector<24x1xf32>
    %151 = vector.broadcast %150 : vector<24x1xf32> to vector<24x8xf32>
    %152 = arith.subf %136, %151 : vector<24x8xf32>
    %153 = arith.mulf %152, %152 : vector<24x8xf32>
    %cst_54 = arith.constant dense<0.000000e+00> : vector<24xf32>
    %154 = vector.multi_reduction <add>, %153, %cst_54 [1] : vector<24x8xf32> to vector<24xf32>
    %155 = vector.shape_cast %154 : vector<24xf32> to vector<24x1xf32>
    %cst_55 = arith.constant 8.000000e+00 : f32
    %156 = vector.broadcast %cst_55 : f32 to vector<24x1xf32>
    %157 = arith.divf %155, %156 : vector<24x1xf32>
    %158 = vector.broadcast %150 : vector<24x1xf32> to vector<24x8xf32>
    %159 = arith.subf %136, %158 : vector<24x8xf32>
    %cst_56 = arith.constant 9.99999974E-6 : f32
    %160 = vector.broadcast %cst_56 : f32 to vector<24x1xf32>
    %161 = arith.addf %157, %160 : vector<24x1xf32>
    %162 = math.rsqrt %161 : vector<24x1xf32>
    %163 = vector.broadcast %162 : vector<24x1xf32> to vector<24x8xf32>
    %164 = arith.mulf %159, %163 : vector<24x8xf32>
    %165 = vector.broadcast %143 : vector<1x8xf32> to vector<24x8xf32>
    %166 = arith.mulf %164, %165 : vector<24x8xf32>
    %167 = vector.broadcast %144 : vector<1x8xf32> to vector<24x8xf32>
    %168 = arith.addf %166, %167 : vector<24x8xf32>
    %169 = arith.truncf %168 : vector<24x8xf32> to vector<24x8xbf16>
    %cst_57 = arith.constant dense<0.000000e+00> : vector<24x32xf32>
    %170 = tpu.matmul %169, %137, %cst_57 {dimension_numbers = #tpu.dot_dimension_numbers<[1], [0], [0], [1], [0, 0, 1, 1], [], []>} : vector<24x8xbf16>, vector<8x32xbf16>, vector<24x32xf32> -> vector<24x32xf32>
    %171 = vector.broadcast %140 : vector<1x32xf32> to vector<24x32xf32>
    %172 = arith.addf %170, %171 : vector<24x32xf32>
    %173 = vector.shape_cast %172 : vector<24x32xf32> to vector<1x24x32xf32>
    %174 = vector.extract_strided_slice %173 {offsets = [0, 0, 0], sizes = [1, 24, 4], strides = [1, 1, 1]} : vector<1x24x32xf32> to vector<1x24x4xf32>
    %175 = vector.extract_strided_slice %173 {offsets = [0, 0, 8], sizes = [1, 24, 4], strides = [1, 1, 1]} : vector<1x24x32xf32> to vector<1x24x4xf32>
    %176 = vector.extract_strided_slice %173 {offsets = [0, 0, 16], sizes = [1, 24, 8], strides = [1, 1, 1]} : vector<1x24x32xf32> to vector<1x24x8xf32>
    %177 = arith.truncf %174 : vector<1x24x4xf32> to vector<1x24x4xbf16>
    %178 = arith.truncf %175 : vector<1x24x4xf32> to vector<1x24x4xbf16>
    "tpu.trace_start"() <{level = 10 : i32, message = "bqd,bkd->bqk"}> : () -> ()
    %cst_58 = arith.constant dense<0.000000e+00> : vector<1x24x24xf32>
    %179 = tpu.matmul %177, %178, %cst_58 {dimension_numbers = #tpu.dot_dimension_numbers<[2], [2], [1], [1], [0, 0, 0, 1, 1, 1], [0], [0]>} : vector<1x24x4xbf16>, vector<1x24x4xbf16>, vector<1x24x24xf32> -> vector<1x24x24xf32>
    "tpu.trace_stop"() : () -> ()
    %180 = arith.addf %179, %12 : vector<1x24x24xf32>
    %cst_59 = arith.constant dense<0xFF800000> : vector<1x24xf32>
    %181 = vector.multi_reduction <maximumf>, %180, %cst_59 [2] : vector<1x24x24xf32> to vector<1x24xf32>
    %182 = vector.shape_cast %181 : vector<1x24xf32> to vector<1x24x1xf32>
    %183 = vector.broadcast %182 : vector<1x24x1xf32> to vector<1x24x24xf32>
    %184 = arith.subf %180, %183 : vector<1x24x24xf32>
    %185 = math.exp %184 : vector<1x24x24xf32>
    %cst_60 = arith.constant dense<0.000000e+00> : vector<1x24xf32>
    %186 = vector.multi_reduction <add>, %185, %cst_60 [2] : vector<1x24x24xf32> to vector<1x24xf32>
    %187 = vector.shape_cast %186 : vector<1x24xf32> to vector<1x24x1xf32>
    %188 = tpu.reciprocal %187 {approx = true} : vector<1x24x1xf32> -> vector<1x24x1xf32>
    %189 = vector.broadcast %188 : vector<1x24x1xf32> to vector<1x24x24xf32>
    %190 = arith.mulf %185, %189 : vector<1x24x24xf32>
    %191 = arith.truncf %190 : vector<1x24x24xf32> to vector<1x24x24xbf16>
    %192 = arith.truncf %176 : vector<1x24x8xf32> to vector<1x24x8xbf16>
    "tpu.trace_start"() <{level = 10 : i32, message = "bqk,bkd->bqd"}> : () -> ()
    %cst_61 = arith.constant dense<0.000000e+00> : vector<1x24x8xf32>
    %193 = tpu.matmul %191, %192, %cst_61 {dimension_numbers = #tpu.dot_dimension_numbers<[2], [1], [1], [2], [0, 0, 0, 1, 1, 2], [0], [0]>} : vector<1x24x24xbf16>, vector<1x24x8xbf16>, vector<1x24x8xf32> -> vector<1x24x8xf32>
    "tpu.trace_stop"() : () -> ()
    %194 = vector.extract_strided_slice %173 {offsets = [0, 0, 4], sizes = [1, 24, 4], strides = [1, 1, 1]} : vector<1x24x32xf32> to vector<1x24x4xf32>
    %195 = vector.extract_strided_slice %173 {offsets = [0, 0, 12], sizes = [1, 24, 4], strides = [1, 1, 1]} : vector<1x24x32xf32> to vector<1x24x4xf32>
    %196 = vector.extract_strided_slice %173 {offsets = [0, 0, 24], sizes = [1, 24, 8], strides = [1, 1, 1]} : vector<1x24x32xf32> to vector<1x24x8xf32>
    %197 = arith.truncf %194 : vector<1x24x4xf32> to vector<1x24x4xbf16>
    %198 = arith.truncf %195 : vector<1x24x4xf32> to vector<1x24x4xbf16>
    "tpu.trace_start"() <{level = 10 : i32, message = "bqd,bkd->bqk"}> : () -> ()
    %cst_62 = arith.constant dense<0.000000e+00> : vector<1x24x24xf32>
    %199 = tpu.matmul %197, %198, %cst_62 {dimension_numbers = #tpu.dot_dimension_numbers<[2], [2], [1], [1], [0, 0, 0, 1, 1, 1], [0], [0]>} : vector<1x24x4xbf16>, vector<1x24x4xbf16>, vector<1x24x24xf32> -> vector<1x24x24xf32>
    "tpu.trace_stop"() : () -> ()
    %200 = arith.addf %199, %12 : vector<1x24x24xf32>
    %cst_63 = arith.constant dense<0xFF800000> : vector<1x24xf32>
    %201 = vector.multi_reduction <maximumf>, %200, %cst_63 [2] : vector<1x24x24xf32> to vector<1x24xf32>
    %202 = vector.shape_cast %201 : vector<1x24xf32> to vector<1x24x1xf32>
    %203 = vector.broadcast %202 : vector<1x24x1xf32> to vector<1x24x24xf32>
    %204 = arith.subf %200, %203 : vector<1x24x24xf32>
    %205 = math.exp %204 : vector<1x24x24xf32>
    %cst_64 = arith.constant dense<0.000000e+00> : vector<1x24xf32>
    %206 = vector.multi_reduction <add>, %205, %cst_64 [2] : vector<1x24x24xf32> to vector<1x24xf32>
    %207 = vector.shape_cast %206 : vector<1x24xf32> to vector<1x24x1xf32>
    %208 = tpu.reciprocal %207 {approx = true} : vector<1x24x1xf32> -> vector<1x24x1xf32>
    %209 = vector.broadcast %208 : vector<1x24x1xf32> to vector<1x24x24xf32>
    %210 = arith.mulf %205, %209 : vector<1x24x24xf32>
    %211 = arith.truncf %210 : vector<1x24x24xf32> to vector<1x24x24xbf16>
    %212 = arith.truncf %196 : vector<1x24x8xf32> to vector<1x24x8xbf16>
    "tpu.trace_start"() <{level = 10 : i32, message = "bqk,bkd->bqd"}> : () -> ()
    %cst_65 = arith.constant dense<0.000000e+00> : vector<1x24x8xf32>
    %213 = tpu.matmul %211, %212, %cst_65 {dimension_numbers = #tpu.dot_dimension_numbers<[2], [1], [1], [2], [0, 0, 0, 1, 1, 2], [0], [0]>} : vector<1x24x24xbf16>, vector<1x24x8xbf16>, vector<1x24x8xf32> -> vector<1x24x8xf32>
    "tpu.trace_stop"() : () -> ()
    %214 = arith.addf %193, %213 : vector<1x24x8xf32>
    %215 = vector.shape_cast %214 : vector<1x24x8xf32> to vector<24x8xf32>
    %216 = arith.addf %136, %215 : vector<24x8xf32>
    %cst_66 = arith.constant dense<0.000000e+00> : vector<24xf32>
    %217 = vector.multi_reduction <add>, %216, %cst_66 [1] : vector<24x8xf32> to vector<24xf32>
    %218 = vector.shape_cast %217 : vector<24xf32> to vector<24x1xf32>
    %cst_67 = arith.constant 8.000000e+00 : f32
    %219 = vector.broadcast %cst_67 : f32 to vector<24x1xf32>
    %220 = arith.divf %218, %219 : vector<24x1xf32>
    %221 = vector.broadcast %220 : vector<24x1xf32> to vector<24x8xf32>
    %222 = arith.subf %216, %221 : vector<24x8xf32>
    %223 = arith.mulf %222, %222 : vector<24x8xf32>
    %cst_68 = arith.constant dense<0.000000e+00> : vector<24xf32>
    %224 = vector.multi_reduction <add>, %223, %cst_68 [1] : vector<24x8xf32> to vector<24xf32>
    %225 = vector.shape_cast %224 : vector<24xf32> to vector<24x1xf32>
    %cst_69 = arith.constant 8.000000e+00 : f32
    %226 = vector.broadcast %cst_69 : f32 to vector<24x1xf32>
    %227 = arith.divf %225, %226 : vector<24x1xf32>
    %228 = vector.broadcast %220 : vector<24x1xf32> to vector<24x8xf32>
    %229 = arith.subf %216, %228 : vector<24x8xf32>
    %cst_70 = arith.constant 9.99999974E-6 : f32
    %230 = vector.broadcast %cst_70 : f32 to vector<24x1xf32>
    %231 = arith.addf %227, %230 : vector<24x1xf32>
    %232 = math.rsqrt %231 : vector<24x1xf32>
    %233 = vector.broadcast %232 : vector<24x1xf32> to vector<24x8xf32>
    %234 = arith.mulf %229, %233 : vector<24x8xf32>
    %235 = vector.broadcast %145 : vector<1x8xf32> to vector<24x8xf32>
    %236 = arith.mulf %234, %235 : vector<24x8xf32>
    %237 = vector.broadcast %146 : vector<1x8xf32> to vector<24x8xf32>
    %238 = arith.addf %236, %237 : vector<24x8xf32>
    %239 = arith.truncf %238 : vector<24x8xf32> to vector<24x8xbf16>
    %cst_71 = arith.constant dense<0.000000e+00> : vector<24x32xf32>
    %240 = tpu.matmul %239, %138, %cst_71 {dimension_numbers = #tpu.dot_dimension_numbers<[1], [0], [0], [1], [0, 0, 1, 1], [], []>} : vector<24x8xbf16>, vector<8x32xbf16>, vector<24x32xf32> -> vector<24x32xf32>
    %241 = vector.broadcast %141 : vector<1x32xf32> to vector<24x32xf32>
    %242 = arith.addf %240, %241 : vector<24x32xf32>
    %243 = arith.mulf %242, %242 : vector<24x32xf32>
    %244 = arith.mulf %242, %243 : vector<24x32xf32>
    %cst_72 = arith.constant 4.471500e-02 : f32
    %245 = vector.broadcast %cst_72 : f32 to vector<24x32xf32>
    %246 = arith.mulf %245, %244 : vector<24x32xf32>
    %247 = arith.addf %242, %246 : vector<24x32xf32>
    %cst_73 = arith.constant 0.797884583 : f32
    %248 = vector.broadcast %cst_73 : f32 to vector<24x32xf32>
    %249 = arith.mulf %248, %247 : vector<24x32xf32>
    %250 = math.tanh %249 : vector<24x32xf32>
    %cst_74 = arith.constant 1.000000e+00 : f32
    %251 = vector.broadcast %cst_74 : f32 to vector<24x32xf32>
    %252 = arith.addf %251, %250 : vector<24x32xf32>
    %cst_75 = arith.constant 5.000000e-01 : f32
    %253 = vector.broadcast %cst_75 : f32 to vector<24x32xf32>
    %254 = arith.mulf %253, %252 : vector<24x32xf32>
    %255 = arith.mulf %242, %254 : vector<24x32xf32>
    %256 = arith.truncf %255 : vector<24x32xf32> to vector<24x32xbf16>
    %cst_76 = arith.constant dense<0.000000e+00> : vector<24x8xf32>
    %257 = tpu.matmul %256, %139, %cst_76 {dimension_numbers = #tpu.dot_dimension_numbers<[1], [0], [0], [1], [0, 0, 1, 1], [], []>} : vector<24x32xbf16>, vector<32x8xbf16>, vector<24x8xf32> -> vector<24x8xf32>
    %258 = arith.addf %216, %257 : vector<24x8xf32>
    %259 = vector.broadcast %142 : vector<1x8xf32> to vector<24x8xf32>
    %260 = arith.addf %258, %259 : vector<24x8xf32>
    %c64 = arith.constant 64 : index
    %c0_77 = arith.constant 0 : index
    %261 = vector.load %arg2[%c64, %c0_77] : memref<168x128xbf16, #tpu.memory_space<vmem>>, vector<8x128xbf16>
    %c25 = arith.constant 25 : index
    %c0_78 = arith.constant 0 : index
    %262 = vector.load %arg3[%c25, %c0_78] : memref<48x128xf32, #tpu.memory_space<vmem>>, vector<1x128xf32>
    %263 = vector.shape_cast %260 : vector<24x8xf32> to vector<1x24x8xf32>
    %264 = vector.extract_strided_slice %263 {offsets = [0, 0, 0], sizes = [1, 1, 8], strides = [1, 1, 1]} : vector<1x24x8xf32> to vector<1x1x8xf32>
    %265 = vector.shape_cast %264 : vector<1x1x8xf32> to vector<1x8xf32>
    %266 = arith.truncf %265 : vector<1x8xf32> to vector<1x8xbf16>
    %cst_79 = arith.constant dense<0.000000e+00> : vector<1x128xf32>
    %267 = tpu.matmul %266, %261, %cst_79 {dimension_numbers = #tpu.dot_dimension_numbers<[1], [0], [0], [1], [0, 0, 1, 1], [], []>} : vector<1x8xbf16>, vector<8x128xbf16>, vector<1x128xf32> -> vector<1x128xf32>
    %268 = arith.addf %267, %262 : vector<1x128xf32>
    %cst_80 = arith.constant dense<0xFF800000> : vector<1xf32>
    %269 = vector.multi_reduction <maximumf>, %268, %cst_80 [1] : vector<1x128xf32> to vector<1xf32>
    %270 = vector.shape_cast %269 : vector<1xf32> to vector<1x1xf32>
    %271 = vector.broadcast %270 : vector<1x1xf32> to vector<1x128xf32>
    %272 = arith.subf %268, %271 : vector<1x128xf32>
    %273 = math.exp %272 : vector<1x128xf32>
    %cst_81 = arith.constant dense<0.000000e+00> : vector<1xf32>
    %274 = vector.multi_reduction <add>, %273, %cst_81 [1] : vector<1x128xf32> to vector<1xf32>
    %275 = vector.shape_cast %274 : vector<1xf32> to vector<1x1xf32>
    %276 = tpu.reciprocal %275 {approx = true} : vector<1x1xf32> -> vector<1x1xf32>
    %277 = vector.broadcast %276 : vector<1x1xf32> to vector<1x128xf32>
    %278 = arith.mulf %273, %277 : vector<1x128xf32>
    %279 = vector.shape_cast %278 : vector<1x128xf32> to vector<1x1x128xf32>
    %c0_82 = arith.constant 0 : index
    %c0_83 = arith.constant 0 : index
    %c0_84 = arith.constant 0 : index
    %280 = vector.load %arg4[%c0_82, %c0_83, %c0_84] : memref<1x1x128xf32, #tpu.memory_space<vmem>>, vector<1x1x128xf32>
    tpu.vector_store %arg4[%c0_82, %c0_83, %c0_84], %279 {strides = array<i32>} : memref<1x1x128xf32, #tpu.memory_space<vmem>>, vector<1x1x128xf32>,
    return
  }
  func.func @transform_0(%arg0: i32) -> (i32, i32, i32) {
    %c0_i32 = arith.constant 0 : i32
    %c0_i32_0 = arith.constant 0 : i32
    %c0_i32_1 = arith.constant 0 : i32
    return %arg0, %c0_i32, %c0_i32_0 : i32, i32, i32
  }
  func.func @transform_1(%arg0: i32) -> (i32, i32) {
    %c0_i32 = arith.constant 0 : i32
    %c0_i32_0 = arith.constant 0 : i32
    %c0_i32_1 = arith.constant 0 : i32
    return %c0_i32, %c0_i32_0 : i32, i32
  }
  func.func @transform_2(%arg0: i32) -> (i32, i32) {
    %c0_i32 = arith.constant 0 : i32
    %c0_i32_0 = arith.constant 0 : i32
    %c0_i32_1 = arith.constant 0 : i32
    return %c0_i32, %c0_i32_0 : i32, i32
  }
  func.func @transform_3(%arg0: i32) -> (i32, i32, i32) {
    %c0_i32 = arith.constant 0 : i32
    %c0_i32_0 = arith.constant 0 : i32
    %c0_i32_1 = arith.constant 0 : i32
    return %arg0, %c0_i32, %c0_i32_0 : i32, i32, i32
  }
}

</mosaic_0001>

<bundles_post_ra>
// kernel: vit_forward.1
= control target key start
LH: loop header
LB: loop body
LE: loop exit
PB: predicated region body
PF: predicated region fallthrough
CT: control target
= control target key end

     0   :  { %8 = vsyncpa [#allocation3], 0  ;;  %s2684_s0 = inlined_call_operand.vmem [shape: bf16[2,24,64], index: 0, kind: input, shape index: {}]   ;;  %s2685_s1 = inlined_call_operand.vmem [shape: bf16[168,128], index: 1, kind: input, shape index: {}]   ;;  %s2686_s2 = inlined_call_operand.vmem [shape: f32[48,128], index: 2, kind: input, shape index: {}]   ;;  %s2687_s3 = inlined_call_operand.hbm [shape: f32[2,1,128], index: 3, kind: output, shape index: {}]  }
   0x1   :  { %10 = vsyncpa [#allocation3 + $0x1], 0  ;;  %s2271_s12 = smov 0   ;;  %s2273_s13 = smov 0  }
   0x2   :  { %s2275_s14 = smov 0   ;;  %s2277_s15 = smov 0  }
   0x3 LB: > { %s2292_s16 = sadd.s32 4294967295, %s2241_s15   ;;  %s1774_s17 = sadd.s32 4294967294, %s2241_s15   ;;  %s2241_s15 = sphi %s2277_s15, %s2693_s15   ;;  %s2237_s14 = sphi %s2275_s14, %s2692_s14   ;;  %s2233_s13 = sphi %s2273_s13, %s2691_s13   ;;  %s2229_s12 = sphi %s2271_s12, %s2690_s12  }
   0x4   : > { %s2296_s18 = sadd.s32 1, %s2241_s15   ;;  %s91_s19 = sadd.s32 1, %s2237_s14 }
   0x5   : > { %s88_s20 = ssub.s32 %s2241_s15, %s2296_s18  ;;  %p101_p0 = scmp.ne.s32.totalorder %s2237_s14, %s2233_s13 }
   0x6   : > { %p89_p1 = scmp.eq.s32.totalorder %s88_s20, 0  ;;  %p102_p2 = scmp.eq.s32.totalorder %s2292_s16, 1 }
   0x7   : > { %p107_p3 = scmp.ne.s32.totalorder %s2233_s13, %s2229_s12  ;;  %p108_p4 = scmp.eq.s32.totalorder %s1774_s17, 1 }
   0x8   : > { %s2307_s21 = scalar_select %p89_p1, %s2237_s14, %s91_s19  }
   0x9   : > { %p2309_p5 = por %p102_p2, %p101_p0  ;;  %p2313_p6 = por %p108_p4, %p107_p3 }
   0xa   : > { %p1777_p7 = scmp.ge.s32.totalorder %s2241_s15, 1  ;;  %p140_p8 = scmp.lt.s32.totalorder %s2241_s15, 3 }
   0xc   : > { %p141_p9 = pnand %p1777_p7, %p140_p8 }
   0xd   : > { %p163_p10 = scmp.lt.s32.totalorder (!%p141_p9), %s2292_s16, 1  ;;  %s2243_s6 = smov (!%p141_p9), 120  }
   0xe   : > { %144 = sbr.rel (%p141_p9) target bundleno = 5054 (0x13be), region = 32  ;;  %s2245_s8 = smov (!%p141_p9), 124  }
   0xf   : > { %s2246_s11 = smov (!%p141_p9), 104   ;;  %s2247_s17 = smov (!%p141_p9), 112  }
  0x10   : > { %s2250_s19 = smov (!%p141_p9), [#allocation2]  }
  0x11   : > { %s2185_s20 = sshll.u32 (!%p141_p9), %s2250_s19, 4  ;;  %s2186_s20 = int_to_ptr.vmem [resolvable:$false] %s2185_s20 }
  0x13   : > { %v2083_v0 = vld [vmem:[%s2685_s1 + $0x18] sm:$0xff]   ;;  %v2084_v1 = vld [vmem:[%s2685_s1 + $0x10] sm:$0xff]   ;;  %s164_s28 = scalar_select %p163_p10, %s2292_s16, 1  ;;  %vm215_vm0 = vcmask 523264   ;;  %v2085_v2 = vld [vmem:[%s2685_s1 + $0x8] sm:$0xff]   ;;  %vm291_vm1 = vcmask 64512  }
  0x14   : > { %1898 = vmatprep.subr.bf16.mxu0 %v2083_v0  ;;  %v2086_v3 = vld [vmem:[%s2685_s1] sm:$0xff]   ;;  %v179_v6 = vld [vmem:[%s2686_s2 + $0x10] sm:$0xff]  ;;  %v178_v14 = vld [vmem:[%s2686_s2 + $0x8] sm:$0xff]  ;;  %vm358_vm2 = vcmask 1043456   ;;  %vm418_vm3 = vcmask 31744   ;;  %vm479_vm4 = vcmask 195584  }
  0x15   : > { %1899 = vmatpush3.bf16.msra.mxu0 %v2083_v0  ;;  %s2036_s4 = smul.u32 12, %s164_s28  ;;  %v177_v8 = vld [vmem:[%s2686_s2] sm:$0xff]  ;;  %vm902_vm5 = vcmask 261120   ;;  %vm2249_vm6 = vmmov 0   ;;  %vm1693_vm7 = vcmask 1040384  }
  0x16   : > { %1900 = vmatprep.subr.bf16.mxu0 %v2084_v1  ;;  %v278_v34 = vld [vmem:[%s2685_s1 + $0x24] sm:$0xf]  ;;  %v1788_v47 = vld [vmem:[%s2686_s2 + $0x23] ss:$0 sm:$0xff]  ;;  %v1790_v61 = vld [vmem:[%s2686_s2 + $0x20] ss:$0 sm:$0xff] }
  0x17   : > { %s167_s7 = scalar_lea.vmem %s2684_s0, %s2036_s4  ;;  %2020 = vmatprep.subr.msk.bf16.mxu1 %vm358_vm2, %v278_v34  ;;  %v360_v35 = vsel %vm358_vm2, %v278_v34, 0  ;;  %v1789_v53 = vld [vmem:[%s2686_s2 + $0x24] ss:$0 sm:$0xff] }
  0x18   : > { %v2087_v4 = vld [vmem:[%s167_s7] sm:$0xff]   ;;  %v2088_v5 = vld [vmem:[%s167_s7 + $0x8] ss:$0 sps:$4 sm:$0xff]   ;;  %1911 = vmatpush3.bf16.msra.mxu1 %v360_v35  ;;  %s2244_s7 = smov 116  }
  0x19   : > { %1901 = vmatpush3.bf16.msra.mxu0 %v2084_v1  ;;  %1906 = vmatprep.mubr.msk.bf16.mxu0 %vm215_vm0, %v2087_v4 }
  0x1a   : > { %1902 = vmatprep.subr.bf16.mxu0 %v2085_v2 }
  0x1d   : > { %1903 = vmatpush3.bf16.msra.mxu0 %v2085_v2 }
  0x1e   : > { %1904 = vmatprep.subr.bf16.mxu0 %v2086_v3 }
  0x21   : > { %1905 = vmatpush3.bf16.msra.mxu0 %v2086_v3 }
  0x24   : > { %1907 = vmatmul.mubr.msk.bf16.vlgmr.msra.gmra.mxu0 %vm215_vm0, %v2088_v5 }
  0xe4   : > { %v1908_v7 = vpop.f32.mrf.mxu0 }
  0xe5   : > { %v2342_v9 = vadd.f32 %v1908_v7, %v179_v6 }
  0xe6   : > { %v256_v10 = vpop.f32.mrf.mxu0 }
  0xe7   : > { %v2344_v11 = vadd.f32 %v256_v10, %v177_v8  ;;  %v298_v12 = vsel %vm291_vm1, %v2342_v9, 0.0 }
  0xe8   : > { %299 = vadd.xlane.f32.xlu1 %v298_v12  ;;  %v1909_v13 = vpop.f32.mrf.mxu0 }
  0xe9   : > { %v292_v15 = vsel %vm291_vm1, %v2344_v11, 0.0 }
  0xea   : > { %293 = vadd.xlane.f32.xlu0 %v292_v15  ;;  %v259_v16 = vpop.f32.mrf.mxu0 }
  0xeb   : > { %v2353_v17 = vadd.f32 %v259_v16, %v178_v14 }
  0xed   : > { %v295_v18 = vsel %vm291_vm1, %v2353_v17, 0.0 }
  0xee   : > { %296 = vadd.xlane.f32.xlu0 %v295_v18 }
 0x171   : > { %v300_v19 = vpop.xlane.xlu1 %299 }
 0x172   : > { %v304_v20 = vmul.f32 0.125, %v300_v19 }
 0x173   : > { %v294_v21 = vpop.xlane.xlu0 %293 }
 0x174   : > { %v302_v22 = vmul.f32 0.125, %v294_v21  ;;  %v307_v23 = vsub.f32 %v2342_v9, %v304_v20 }
 0x176   : > { %v305_v24 = vsub.f32 %v2344_v11, %v302_v22  ;;  %v310_v30 = vmul.f32 %v307_v23, %v307_v23  ;;  %v2412_v22 = vld [vmem:[%s2686_s2 + $0x18] ss:$0 sm:$0xff] }
 0x177   : > { %v297_v25 = vpop.xlane.xlu0 %296 }
 0x178   : > { %v303_v26 = vmul.f32 0.125, %v297_v25  ;;  %v308_v27 = vmul.f32 %v305_v24, %v305_v24  ;;  %v317_v32 = vsel %vm291_vm1, %v310_v30, 0.0 }
 0x17a   : > { %v306_v28 = vsub.f32 %v2353_v17, %v303_v26  ;;  %v311_v29 = vsel %vm291_vm1, %v308_v27, 0.0 }
 0x17b   : > { %312 = vadd.xlane.f32.xlu1 %v311_v29 }
 0x17c   : > { %v309_v31 = vmul.f32 %v306_v28, %v306_v28 }
 0x17e   : > { %v314_v33 = vsel %vm291_vm1, %v309_v31, 0.0 }
 0x17f   : > { %318 = vadd.xlane.f32.xlu1 %v317_v32  ;;  %315 = vadd.xlane.f32.xlu0 %v314_v33 }
 0x204   : > { %v313_v36 = vpop.xlane.xlu1 %312 }
 0x205   : > { %v320_v37 = vmul.f32 0.125, %v313_v36 }
 0x207   : > { %v323_v38 = vadd.f32 1e-05, %v320_v37 }
 0x208   : > { %v319_v39 = vpop.xlane.xlu1 %318  ;;  %v316_v40 = vpop.xlane.xlu0 %315 }
 0x209   : > { %2093 = vrsqrt.f32 %v323_v38  ;;  %v322_v41 = vmul.f32 0.125, %v319_v39  ;;  %v321_v42 = vmul.f32 0.125, %v316_v40 }
 0x20b   : > { %v325_v43 = vadd.f32 1e-05, %v322_v41  ;;  %v324_v44 = vadd.f32 1e-05, %v321_v42 }
 0x20d   : > { %2095 = vrsqrt.f32 %v325_v43 }
 0x20e   : > { %2097 = vrsqrt.f32 %v324_v44 }
 0x216   : > { %v2094_v45 = vpop.eup %2093 }
 0x217   : > { %v329_v46 = vmul.f32 %v2094_v45, %v305_v24 }
 0x219   : > { %v336_v52 = vmul.f32 %v1788_v47, %v329_v46 }
 0x21a   : > { %v2096_v48 = vpop.eup %2095 }
 0x21b   : > { %v2098_v49 = vpop.eup %2097  ;;  %v331_v50 = vmul.f32 %v2096_v48, %v307_v23  ;;  %v343_v57 = vadd.f32 %v1789_v53, %v336_v52 }
 0x21c   : > { %v330_v51 = vmul.f32 %v2098_v49, %v306_v28 }
 0x21d   : > { %v338_v54 = vmul.f32 %v1788_v47, %v331_v50 }
 0x21e   : > { %v337_v55 = vmul.f32 %v1788_v47, %v330_v51 }
 0x21f   : > { %v345_v56 = vadd.f32 %v1789_v53, %v338_v54 }
 0x220   : > { %v344_v58 = vadd.f32 %v1789_v53, %v337_v55 }
 0x221   : > { %v347_v59 = vpack.c.bf16 %v345_v56, %v345_v56 }
 0x222   : > { %v346_v60 = vpack.c.bf16 %v344_v58, %v343_v57 }
 0x224   : > { %1912 = vmatprep.mubr.msk.bf16.mxu1 %vm291_vm1, %v346_v60 }
 0x225   : > { %1913 = vmatmul.mubr.msk.bf16.vlgmr.msra.gmra.mxu1 %vm291_vm1, %v347_v59 }
 0x2e5   : > { %v1914_v62 = vpop.f32.mrf.mxu1 }
 0x2e6   : > { %v405_v63 = vadd.f32 %v1914_v62, %v1790_v61 }
 0x2e7   : > { %v396_v0 = vpop.f32.mrf.mxu1 }
 0x2e8   : > { %v2379_v1 = vpack.c.bf16 %v405_v63, %v405_v63  ;;  %v397_v4 = vadd.f32 %v1790_v61, %v396_v0 }
 0x2e9   : > { %v1915_v2 = vpop.f32.mrf.mxu1 }
 0x2ea   : > { %416 = vrot.lane.b32.xlu1 %v2379_v1, %s2243_s6  ;;  %521 = vrot.lane.b32.xlu0 %v2379_v1, %s2244_s7 }
 0x2eb   : > { %v399_v3 = vpop.f32.mrf.mxu1 }
 0x2ec   : > { %v400_v5 = vadd.f32 %v1790_v61, %v399_v3 }
 0x2ee   : > { %v2385_v6 = vpack.c.bf16 %v400_v5, %v397_v4 }
 0x2f0   : > { %414 = vrot.lane.b32.xlu0 %v2385_v6, %s2243_s6  ;;  %519 = vrot.lane.b32.xlu1 %v2385_v6, %s2244_s7 }
 0x2f1   : > { %1920 = vmatprep.mubr.msk.bf16.mxu1 %vm418_vm3, %v2385_v6 }
 0x2f4   : > { %515 = vrot.lane.b32.xlu1 %v2385_v6, %s2245_s8 }
 0x2f8   : > { %517 = vrot.lane.b32.xlu1 %v2379_v1, %s2245_s8 }
 0x35c   : > { %v417_v7 = vpop.permute.xlu1 %416  ;;  %v522_v8 = vpop.permute.xlu0 %521 }
 0x35d   : > { %v429_v10 = vsel %vm418_vm3, %v417_v7, 0  ;;  %v533_v12 = vsel %vm418_vm3, %v522_v8, 0  ;;  %2021 = vmatprep.subr.msk.bf16.mxu1 %vm418_vm3, %v417_v7  ;;  %2023 = vmatprep.subr.msk.bf16.mxu0 %vm418_vm3, %v522_v8 }
 0x35e   : > { %1917 = vmatpush3.bf16.xpose.msra.mxu1 %v429_v10  ;;  %1925 = vmatpush3.bf16.xpose.msra.mxu0 %v533_v12 }
 0x362   : > { %v415_v13 = vpop.permute.xlu0 %414  ;;  %v520_v14 = vpop.permute.xlu1 %519 }
 0x363   : > { %2022 = vmatprep.subr.msk.bf16.mxu1 %vm418_vm3, %v415_v13  ;;  %2024 = vmatprep.subr.msk.bf16.mxu0 %vm418_vm3, %v520_v14  ;;  %v426_v15 = vsel %vm418_vm3, %v415_v13, 0  ;;  %v530_v16 = vsel %vm418_vm3, %v520_v14, 0 }
 0x366   : > { %1919 = vmatpush3.bf16.xpose.msra.mxu1 %v426_v15  ;;  %1927 = vmatpush3.bf16.xpose.msra.mxu0 %v530_v16  ;;  %v516_v18 = vpop.permute.xlu1 %515 }
 0x367   : > { %1928 = vmatprep.mubr.msk.bf16.mxu0 %vm418_vm3, %v516_v18 }
 0x36a   : > { %v518_v19 = vpop.permute.xlu1 %517 }
 0x36d   : > { %1921 = vmatmul.mubr.msk.bf16.vlgmr.msra.gmra.mxu1 %vm418_vm3, %v2379_v1  ;;  %1929 = vmatmul.mubr.msk.bf16.vlgmr.msra.gmra.mxu0 %vm418_vm3, %v518_v19 }
 0x42d   : > { %v1922_v20 = vpop.f32.mrf.mxu1  ;;  %v1930_v21 = vpop.f32.mrf.mxu0 }
 0x42e   : > { %v578_v28 = vadd.f32 %v1930_v21, %v2412_v22  ;;  %v474_v32 = vadd.f32 %v1922_v20, %v2412_v22 }
 0x42f   : > { %v465_v23 = vpop.f32.mrf.mxu1  ;;  %v569_v24 = vpop.f32.mrf.mxu0 }
 0x430   : > { %v570_v25 = vadd.f32 %v2412_v22, %v569_v24  ;;  %v466_v33 = vadd.f32 %v2412_v22, %v465_v23  ;;  %v589_v35 = vsel %vm479_vm4, %v578_v28, -inf  ;;  %v486_v38 = vsel %vm479_vm4, %v474_v32, -inf }
 0x431   : > { %v1923_v26 = vpop.f32.mrf.mxu1  ;;  %v1931_v27 = vpop.f32.mrf.mxu0 }
 0x432   : > { %v583_v29 = vsel %vm479_vm4, %v570_v25, -inf  ;;  %v480_v39 = vsel %vm479_vm4, %v466_v33, -inf }
 0x433   : > { %v572_v30 = vpop.f32.mrf.mxu0  ;;  %584 = vmax.xlane.f32.xlu0 %v583_v29  ;;  %v468_v36 = vpop.f32.mrf.mxu1 }
 0x434   : > { %v573_v31 = vadd.f32 %v2412_v22, %v572_v30  ;;  %v469_v37 = vadd.f32 %v2412_v22, %v468_v36 }
 0x436   : > { %v586_v34 = vsel %vm479_vm4, %v573_v31, -inf  ;;  %v483_v40 = vsel %vm479_vm4, %v469_v37, -inf }
 0x437   : > { %587 = vmax.xlane.f32.xlu1 %v586_v34  ;;  %590 = vmax.xlane.f32.xlu0 %v589_v35 }
 0x43b   : > { %487 = vmax.xlane.f32.xlu1 %v486_v38  ;;  %481 = vmax.xlane.f32.xlu0 %v480_v39 }
 0x43f   : > { %484 = vmax.xlane.f32.xlu0 %v483_v40 }
 0x4bc   : > { %v585_v41 = vpop.xlane.xlu0 %584 }
 0x4bd   : > { %v592_v42 = vsub.f32 %v570_v25, %v585_v41 }
 0x4bf   : > { %v595_v47 = vmul.f32 1.442695, %v592_v42 }
 0x4c0   : > { %v588_v43 = vpop.xlane.xlu1 %587  ;;  %v591_v44 = vpop.xlane.xlu0 %590 }
 0x4c1   : > { %v594_v45 = vsub.f32 %v578_v28, %v591_v44  ;;  %v593_v52 = vsub.f32 %v573_v31, %v588_v43 }
 0x4c3   : > { %v599_v46 = vmul.f32 1.442695, %v594_v45  ;;  %v597_v57 = vmul.f32 1.442695, %v593_v52 }
 0x4c4   : > { %v488_v48 = vpop.xlane.xlu1 %487  ;;  %v482_v49 = vpop.xlane.xlu0 %481 }
 0x4c5   : > { %v491_v50 = vsub.f32 %v474_v32, %v488_v48  ;;  %v489_v51 = vsub.f32 %v466_v33, %v482_v49  ;;  %2099 = vpow2.f32 %v599_v46 }
 0x4c6   : > { %2101 = vpow2.f32 %v595_v47 }
 0x4c7   : > { %v496_v53 = vmul.f32 1.442695, %v491_v50  ;;  %v492_v54 = vmul.f32 1.442695, %v489_v51 }
 0x4c8   : > { %v485_v55 = vpop.xlane.xlu0 %484 }
 0x4c9   : > { %2103 = vpow2.f32 %v496_v53  ;;  %v490_v56 = vsub.f32 %v469_v37, %v485_v55 }
 0x4ca   : > { %2105 = vpow2.f32 %v492_v54 }
 0x4cb   : > { %v494_v58 = vmul.f32 1.442695, %v490_v56 }
 0x4cd   : > { %2107 = vpow2.f32 %v494_v58 }
 0x4ce   : > { %2109 = vpow2.f32 %v597_v57 }
 0x4d2   : > { %v2100_v59 = vpop.eup %2099 }
 0x4d3   : > { %v607_v60 = vsel %vm479_vm4, %v2100_v59, 0.0  ;;  %v2102_v61 = vpop.eup %2101 }
 0x4d4   : > { %608 = vadd.xlane.f32.xlu0 %v607_v60  ;;  %v601_v2 = vsel %vm479_vm4, %v2102_v61, 0.0 }
 0x4d6   : > { %v2104_v62 = vpop.eup %2103 }
 0x4d7   : > { %v504_v63 = vsel %vm479_vm4, %v2104_v62, 0.0  ;;  %v2106_v0 = vpop.eup %2105 }
 0x4d8   : > { %505 = vadd.xlane.f32.xlu1 %v504_v63  ;;  %602 = vadd.xlane.f32.xlu0 %v601_v2  ;;  %v498_v4 = vsel %vm479_vm4, %v2106_v0, 0.0 }
 0x4da   : > { %v2108_v3 = vpop.eup %2107 }
 0x4db   : > { %v501_v5 = vsel %vm479_vm4, %v2108_v3, 0.0  ;;  %v2110_v7 = vpop.eup %2109 }
 0x4dc   : > { %499 = vadd.xlane.f32.xlu1 %v498_v4  ;;  %502 = vadd.xlane.f32.xlu0 %v501_v5  ;;  %v604_v8 = vsel %vm479_vm4, %v2110_v7, 0.0  ;;  %v279_v5 = vld [vmem:[%s2685_s1 + $0x28] sm:$0xf] }
 0x4dd   : > { %2027 = vmatprep.subr.msk.bf16.mxu0 %vm358_vm2, %v279_v5 }
 0x4e0   : > { %605 = vadd.xlane.f32.xlu1 %v604_v8 }
 0x4f1   : > { %618 = vrot.lane.b32.xlu1 %v2385_v6, %s2246_s11 }
 0x4f2   : > { %620 = vrot.lane.b32.xlu0 %v2379_v1, %s2246_s11 }
 0x4f5   : > { %682 = vrot.lane.b32.xlu1 %v2379_v1, %s2247_s17 }
 0x4f9   : > { %680 = vrot.lane.b32.xlu1 %v2385_v6, %s2247_s17 }
 0x55d   : > { %v609_v10 = vpop.xlane.xlu0 %608 }
 0x55e   : > { %2111 = vrcp.f32 %v609_v10 }
 0x561   : > { %v506_v12 = vpop.xlane.xlu1 %505  ;;  %v603_v13 = vpop.xlane.xlu0 %602 }
 0x562   : > { %2113 = vrcp.f32 %v603_v13 }
 0x565   : > { %v500_v14 = vpop.xlane.xlu1 %499  ;;  %v503_v15 = vpop.xlane.xlu0 %502 }
 0x566   : > { %2115 = vrcp.f32 %v500_v14 }
 0x567   : > { %2117 = vrcp.f32 %v503_v15 }
 0x569   : > { %v606_v16 = vpop.xlane.xlu1 %605  ;;  %v621_v18 = vpop.permute.xlu0 %620 }
 0x56a   : > { %2119 = vrcp.f32 %v606_v16  ;;  %v630_v19 = vsel %vm358_vm2, %v621_v18, 0  ;;  %2025 = vmatprep.subr.msk.bf16.mxu1 %vm358_vm2, %v621_v18 }
 0x56b   : > { %1933 = vmatpush3.bf16.msra.mxu1 %v630_v19  ;;  %2121 = vrcp.f32 %v506_v12  ;;  %v2112_v20 = vpop.eup %2111 }
 0x56c   : > { %v615_v26 = vmul.f32 %v2112_v20, %v2100_v59  ;;  %v1801_v20 = vld [vmem:[%s2686_s2 + $0x25] ss:$0 sm:$0xff] }
 0x56d   : > { %v619_v1 = vpop.permute.xlu1 %618 }
 0x56e   : > { %1934 = vmatprep.subr.bf16.mxu1 %v619_v1  ;;  %v617_v32 = vpack.c.bf16 %v615_v26, %v615_v26 }
 0x56f   : > { %1935 = vmatpush3.bf16.msra.mxu1 %v619_v1  ;;  %v2114_v21 = vpop.eup %2113 }
 0x570   : > { %v613_v27 = vmul.f32 %v2114_v21, %v2102_v61 }
 0x571   : > { %v683_v6 = vpop.permute.xlu1 %682 }
 0x572   : > { %2026 = vmatprep.subr.msk.bf16.mxu1 %vm358_vm2, %v683_v6  ;;  %v692_v35 = vsel %vm358_vm2, %v683_v6, 0 }
 0x573   : > { %v2116_v23 = vpop.eup %2115 }
 0x574   : > { %v2118_v24 = vpop.eup %2117  ;;  %v510_v29 = vmul.f32 %v2116_v23, %v2106_v0 }
 0x575   : > { %v511_v30 = vmul.f32 %v2118_v24, %v2108_v3  ;;  %v681_v36 = vpop.permute.xlu1 %680 }
 0x577   : > { %v2120_v25 = vpop.eup %2119  ;;  %v513_v34 = vpack.c.bf16 %v511_v30, %v510_v29 }
 0x578   : > { %v614_v28 = vmul.f32 %v2120_v25, %v2110_v7  ;;  %v2122_v33 = vpop.eup %2121  ;;  %v811_v7 = vsel %vm358_vm2, %v279_v5, 0 }
 0x579   : > { %v512_v37 = vmul.f32 %v2122_v33, %v2104_v62  ;;  %1949 = vmatpush3.bf16.msra.mxu0 %v811_v7 }
 0x57a   : > { %v616_v31 = vpack.c.bf16 %v614_v28, %v613_v27  ;;  %v1802_v27 = vld [vmem:[%s2686_s2 + $0x26] ss:$0 sm:$0xff] }
 0x57b   : > { %v514_v38 = vpack.c.bf16 %v512_v37, %v512_v37  ;;  %v1803_v37 = vld [vmem:[%s2686_s2 + $0x21] ss:$0 sm:$0xff] }
 0x57c   : > { %1936 = vmatprep.mubr.msk.bf16.mxu1 %vm479_vm4, %v616_v31 }
 0x57d   : > { %1937 = vmatmul.mubr.msk.bf16.vlgmr.msra.gmra.mxu1 %vm479_vm4, %v617_v32 }
 0x57e   : > { %1941 = vmatpush3.bf16.msra.mxu1 %v692_v35  ;;  %1944 = vmatprep.mubr.msk.bf16.mxu1 %vm479_vm4, %v513_v34  ;;  %v2089_v35 = vld [vmem:[%s2685_s1 + $0x34] sm:$0xff]  }
 0x57f   : > { %1942 = vmatprep.subr.bf16.mxu1 %v681_v36 }
 0x582   : > { %1943 = vmatpush3.bf16.msra.mxu1 %v681_v36  ;;  %v2090_v36 = vld [vmem:[%s2685_s1 + $0x2c] sm:$0xff]  }
 0x583   : > { %1954 = vmatprep.subr.bf16.mxu1 %v2089_v35 }
 0x585   : > { %1945 = vmatmul.mubr.msk.bf16.vlgmr.msra.gmra.mxu1 %vm479_vm4, %v514_v38 }
 0x586   : > { %1955 = vmatpush3.bf16.msra.mxu1 %v2089_v35 }
 0x587   : > { %1956 = vmatprep.subr.bf16.mxu1 %v2090_v36 }
 0x58a   : > { %1957 = vmatpush3.bf16.msra.mxu1 %v2090_v36 }
 0x63d   : > { %v1938_v39 = vpop.f32.mrf.mxu1 }
 0x63f   : > { %v666_v40 = vpop.f32.mrf.mxu1 }
 0x641   : > { %v1939_v41 = vpop.f32.mrf.mxu1 }
 0x643   : > { %v669_v42 = vpop.f32.mrf.mxu1 }
 0x645   : > { %v1946_v43 = vpop.f32.mrf.mxu1 }
 0x646   : > { %v737_v45 = vadd.f32 %v1946_v43, %v1938_v39 }
 0x647   : > { %v728_v44 = vpop.f32.mrf.mxu1 }
 0x648   : > { %v729_v46 = vadd.f32 %v728_v44, %v666_v40  ;;  %v2452_v50 = vadd.f32 %v737_v45, %v2342_v9 }
 0x649   : > { %v1947_v47 = vpop.f32.mrf.mxu1 }
 0x64a   : > { %v2449_v48 = vadd.f32 %v729_v46, %v2344_v11  ;;  %v751_v55 = vsel %vm291_vm1, %v2452_v50, 0.0 }
 0x64b   : > { %v731_v49 = vpop.f32.mrf.mxu1 }
 0x64c   : > { %v732_v51 = vadd.f32 %v731_v49, %v669_v42  ;;  %v745_v52 = vsel %vm291_vm1, %v2449_v48, 0.0 }
 0x64d   : > { %746 = vadd.xlane.f32.xlu0 %v745_v52 }
 0x64e   : > { %v2457_v53 = vadd.f32 %v732_v51, %v2353_v17 }
 0x650   : > { %v748_v54 = vsel %vm291_vm1, %v2457_v53, 0.0 }
 0x651   : > { %749 = vadd.xlane.f32.xlu1 %v748_v54  ;;  %752 = vadd.xlane.f32.xlu0 %v751_v55 }
 0x6d6   : > { %v747_v11 = vpop.xlane.xlu0 %746 }
 0x6d7   : > { %v754_v56 = vmul.f32 0.125, %v747_v11 }
 0x6d9   : > { %v757_v9 = vsub.f32 %v2449_v48, %v754_v56 }
 0x6da   : > { %v750_v57 = vpop.xlane.xlu1 %749  ;;  %v753_v58 = vpop.xlane.xlu0 %752 }
 0x6db   : > { %v755_v59 = vmul.f32 0.125, %v750_v57  ;;  %v756_v60 = vmul.f32 0.125, %v753_v58  ;;  %v760_v61 = vmul.f32 %v757_v9, %v757_v9 }
 0x6dd   : > { %v758_v17 = vsub.f32 %v2457_v53, %v755_v59  ;;  %v759_v62 = vsub.f32 %v2452_v50, %v756_v60  ;;  %v763_v63 = vsel %vm291_vm1, %v760_v61, 0.0 }
 0x6de   : > { %764 = vadd.xlane.f32.xlu0 %v763_v63 }
 0x6df   : > { %v761_v0 = vmul.f32 %v758_v17, %v758_v17  ;;  %v762_v2 = vmul.f32 %v759_v62, %v759_v62 }
 0x6e1   : > { %v766_v3 = vsel %vm291_vm1, %v761_v0, 0.0  ;;  %v769_v4 = vsel %vm291_vm1, %v762_v2, 0.0 }
 0x6e2   : > { %767 = vadd.xlane.f32.xlu0 %v766_v3  ;;  %770 = vadd.xlane.f32.xlu1 %v769_v4 }
 0x767   : > { %v765_v8 = vpop.xlane.xlu0 %764 }
 0x768   : > { %v772_v10 = vmul.f32 0.125, %v765_v8 }
 0x76a   : > { %v775_v12 = vadd.f32 1e-05, %v772_v10 }
 0x76b   : > { %v771_v13 = vpop.xlane.xlu1 %770  ;;  %v768_v14 = vpop.xlane.xlu0 %767 }
 0x76c   : > { %2123 = vrsqrt.f32 %v775_v12  ;;  %v774_v15 = vmul.f32 0.125, %v771_v13  ;;  %v773_v16 = vmul.f32 0.125, %v768_v14 }
 0x76e   : > { %v777_v18 = vadd.f32 1e-05, %v774_v15  ;;  %v776_v19 = vadd.f32 1e-05, %v773_v16 }
 0x770   : > { %2125 = vrsqrt.f32 %v777_v18 }
 0x771   : > { %2127 = vrsqrt.f32 %v776_v19  ;;  %v1810_v19 = vld [vmem:[%s2686_s2 + $0x22] ss:$0 sm:$0xff] }
 0x779   : > { %v2124_v1 = vpop.eup %2123 }
 0x77a   : > { %v781_v6 = vmul.f32 %v2124_v1, %v757_v9 }
 0x77c   : > { %v788_v26 = vmul.f32 %v1801_v20, %v781_v6 }
 0x77d   : > { %v2126_v21 = vpop.eup %2125 }
 0x77e   : > { %v2128_v23 = vpop.eup %2127  ;;  %v783_v24 = vmul.f32 %v2126_v21, %v759_v62  ;;  %v795_v31 = vadd.f32 %v1802_v27, %v788_v26 }
 0x77f   : > { %v782_v25 = vmul.f32 %v2128_v23, %v758_v17 }
 0x780   : > { %v790_v28 = vmul.f32 %v1801_v20, %v783_v24 }
 0x781   : > { %v789_v29 = vmul.f32 %v1801_v20, %v782_v25 }
 0x782   : > { %v797_v30 = vadd.f32 %v1802_v27, %v790_v28 }
 0x783   : > { %v796_v32 = vadd.f32 %v1802_v27, %v789_v29 }
 0x784   : > { %v799_v33 = vpack.c.bf16 %v797_v30, %v797_v30 }
 0x785   : > { %v798_v34 = vpack.c.bf16 %v796_v32, %v795_v31 }
 0x787   : > { %1950 = vmatprep.mubr.msk.bf16.mxu0 %vm291_vm1, %v798_v34 }
 0x788   : > { %1951 = vmatmul.mubr.msk.bf16.vlgmr.msra.gmra.mxu0 %vm291_vm1, %v799_v33 }
 0x848   : > { %v1952_v38 = vpop.f32.mrf.mxu0 }
 0x849   : > { %v856_v39 = vadd.f32 %v1952_v38, %v1803_v37 }
 0x84a   : > { %v847_v40 = vpop.f32.mrf.mxu0 }
 0x84b   : > { %v863_v41 = vmul.f32 %v856_v39, %v856_v39  ;;  %v848_v42 = vadd.f32 %v1803_v37, %v847_v40  ;;  %v967_v40 = vld [vmem:[%s2685_s1 + $0x3c] sm:$0xf] }
 0x84c   : > { %v1953_v43 = vpop.f32.mrf.mxu0  ;;  %2028 = vmatprep.subr.msk.bf16.mxu0 %vm358_vm2, %v967_v40 }
 0x84d   : > { %v866_v44 = vmul.f32 %v863_v41, %v856_v39  ;;  %v861_v45 = vmul.f32 %v848_v42, %v848_v42  ;;  %v1046_v41 = vsel %vm358_vm2, %v967_v40, 0 }
 0x84e   : > { %v850_v46 = vpop.f32.mrf.mxu0  ;;  %1963 = vmatpush3.bf16.msra.mxu0 %v1046_v41 }
 0x84f   : > { %v869_v47 = vmul.f32 0.044715, %v866_v44  ;;  %v864_v49 = vmul.f32 %v861_v45, %v848_v42  ;;  %v851_v51 = vadd.f32 %v1803_v37, %v850_v46 }
 0x851   : > { %v872_v52 = vadd.f32 %v869_v47, %v856_v39  ;;  %v867_v54 = vmul.f32 0.044715, %v864_v49  ;;  %v862_v55 = vmul.f32 %v851_v51, %v851_v51 }
 0x853   : > { %v875_v11 = vmul.f32 0.7978846, %v872_v52  ;;  %v870_v56 = vadd.f32 %v867_v54, %v848_v42  ;;  %v865_v9 = vmul.f32 %v862_v55, %v851_v51 }
 0x855   : > { %2129 = vtanh.f32 %v875_v11  ;;  %v873_v57 = vmul.f32 0.7978846, %v870_v56  ;;  %v868_v58 = vmul.f32 0.044715, %v865_v9  ;;  %v1811_v11 = vld [vmem:[%s2686_s2 + $0x2b] ss:$0 sm:$0xff] }
 0x857   : > { %2131 = vtanh.f32 %v873_v57  ;;  %v871_v59 = vadd.f32 %v868_v58, %v851_v51 }
 0x859   : > { %v874_v60 = vmul.f32 0.7978846, %v871_v59 }
 0x85b   : > { %2133 = vtanh.f32 %v874_v60  ;;  %v1812_v60 = vld [vmem:[%s2686_s2 + $0x2c] ss:$0 sm:$0xff] }
 0x862   : > { %v2130_v61 = vpop.eup %2129 }
 0x863   : > { %v881_v62 = vadd.f32 1.0, %v2130_v61 }
 0x864   : > { %v2132_v17 = vpop.eup %2131 }
 0x865   : > { %v879_v63 = vadd.f32 1.0, %v2132_v17  ;;  %v884_v2 = vmul.f32 0.5, %v881_v62 }
 0x867   : > { %v882_v3 = vmul.f32 0.5, %v879_v63  ;;  %v887_v7 = vmul.f32 %v884_v2, %v856_v39 }
 0x868   : > { %v2134_v0 = vpop.eup %2133 }
 0x869   : > { %v880_v4 = vadd.f32 1.0, %v2134_v0  ;;  %v885_v8 = vmul.f32 %v882_v3, %v848_v42  ;;  %v889_v13 = vpack.c.bf16 %v887_v7, %v887_v7 }
 0x86b   : > { %v883_v5 = vmul.f32 0.5, %v880_v4  ;;  %v1813_v4 = vld [vmem:[%s2686_s2 + $0x28] ss:$0 sm:$0xff] }
 0x86d   : > { %v886_v10 = vmul.f32 %v883_v5, %v851_v51 }
 0x86f   : > { %v888_v12 = vpack.c.bf16 %v886_v10, %v885_v8 }
 0x871   : > { %1958 = vmatprep.mubr.msk.bf16.mxu1 %vm902_vm5, %v888_v12 }
 0x872   : > { %1959 = vmatmul.mubr.msk.bf16.vlgmr.msra.gmra.mxu1 %vm902_vm5, %v889_v13 }
 0x932   : > { %v1960_v14 = vpop.f32.mrf.mxu1 }
 0x933   : > { %v959_v16 = vadd.f32 %v1960_v14, %v2452_v50 }
 0x934   : > { %v943_v15 = vpop.f32.mrf.mxu1 }
 0x935   : > { %v957_v18 = vadd.f32 %v943_v15, %v2449_v48  ;;  %v2500_v21 = vadd.f32 %v1810_v19, %v959_v16 }
 0x936   : > { %v1961_v1 = vpop.f32.mrf.mxu1 }
 0x937   : > { %v2498_v6 = vadd.f32 %v1810_v19, %v957_v18  ;;  %v986_v48 = vsel %vm291_vm1, %v2500_v21, 0.0 }
 0x938   : > { %v946_v20 = vpop.f32.mrf.mxu1 }
 0x939   : > { %v958_v23 = vadd.f32 %v946_v20, %v2457_v53  ;;  %v980_v24 = vsel %vm291_vm1, %v2498_v6, 0.0 }
 0x93a   : > { %981 = vadd.xlane.f32.xlu0 %v980_v24 }
 0x93b   : > { %v2505_v25 = vadd.f32 %v1810_v19, %v958_v23 }
 0x93d   : > { %v983_v50 = vsel %vm291_vm1, %v2505_v25, 0.0 }
 0x93e   : > { %987 = vadd.xlane.f32.xlu0 %v986_v48  ;;  %984 = vadd.xlane.f32.xlu1 %v983_v50 }
 0x9c3   : > { %v982_v26 = vpop.xlane.xlu0 %981 }
 0x9c4   : > { %v989_v27 = vmul.f32 0.125, %v982_v26 }
 0x9c6   : > { %v992_v28 = vsub.f32 %v2498_v6, %v989_v27 }
 0x9c7   : > { %v988_v29 = vpop.xlane.xlu0 %987  ;;  %v985_v53 = vpop.xlane.xlu1 %984 }
 0x9c8   : > { %v991_v30 = vmul.f32 0.125, %v988_v29  ;;  %v990_v31 = vmul.f32 0.125, %v985_v53  ;;  %v995_v32 = vmul.f32 %v992_v28, %v992_v28 }
 0x9ca   : > { %v994_v33 = vsub.f32 %v2500_v21, %v991_v30  ;;  %v993_v34 = vsub.f32 %v2505_v25, %v990_v31  ;;  %v998_v35 = vsel %vm291_vm1, %v995_v32, 0.0 }
 0x9cb   : > { %999 = vadd.xlane.f32.xlu1 %v998_v35 }
 0x9cc   : > { %v997_v36 = vmul.f32 %v994_v33, %v994_v33  ;;  %v996_v37 = vmul.f32 %v993_v34, %v993_v34 }
 0x9ce   : > { %v1004_v38 = vsel %vm291_vm1, %v997_v36, 0.0  ;;  %v1001_v39 = vsel %vm291_vm1, %v996_v37, 0.0 }
 0x9cf   : > { %1005 = vadd.xlane.f32.xlu1 %v1004_v38  ;;  %1002 = vadd.xlane.f32.xlu0 %v1001_v39 }
 0xa54   : > { %v1000_v42 = vpop.xlane.xlu1 %999 }
 0xa55   : > { %v1007_v43 = vmul.f32 0.125, %v1000_v42 }
 0xa57   : > { %v1010_v44 = vadd.f32 1e-05, %v1007_v43 }
 0xa58   : > { %v1003_v45 = vpop.xlane.xlu0 %1002  ;;  %v1006_v46 = vpop.xlane.xlu1 %1005 }
 0xa59   : > { %2135 = vrsqrt.f32 %v1010_v44  ;;  %v1008_v47 = vmul.f32 0.125, %v1003_v45  ;;  %v1009_v49 = vmul.f32 0.125, %v1006_v46 }
 0xa5b   : > { %v1011_v51 = vadd.f32 1e-05, %v1008_v47  ;;  %v1012_v52 = vadd.f32 1e-05, %v1009_v49 }
 0xa5d   : > { %2137 = vrsqrt.f32 %v1011_v51 }
 0xa5e   : > { %2139 = vrsqrt.f32 %v1012_v52 }
 0xa66   : > { %v2136_v54 = vpop.eup %2135 }
 0xa67   : > { %v1016_v55 = vmul.f32 %v2136_v54, %v992_v28 }
 0xa69   : > { %v1023_v58 = vmul.f32 %v1811_v11, %v1016_v55 }
 0xa6a   : > { %v2138_v56 = vpop.eup %2137 }
 0xa6b   : > { %v2140_v9 = vpop.eup %2139  ;;  %v1017_v57 = vmul.f32 %v2138_v56, %v993_v34  ;;  %v1030_v62 = vadd.f32 %v1812_v60, %v1023_v58 }
 0xa6c   : > { %v1018_v59 = vmul.f32 %v2140_v9, %v994_v33 }
 0xa6d   : > { %v1024_v61 = vmul.f32 %v1811_v11, %v1017_v57 }
 0xa6e   : > { %v1025_v17 = vmul.f32 %v1811_v11, %v1018_v59 }
 0xa6f   : > { %v1031_v63 = vadd.f32 %v1812_v60, %v1024_v61 }
 0xa70   : > { %v1032_v0 = vadd.f32 %v1812_v60, %v1025_v17 }
 0xa71   : > { %v1033_v2 = vpack.c.bf16 %v1031_v63, %v1030_v62 }
 0xa72   : > { %v1034_v3 = vpack.c.bf16 %v1032_v0, %v1032_v0 }
 0xa73   : > { %1964 = vmatprep.mubr.msk.bf16.mxu0 %vm291_vm1, %v1033_v2 }
 0xa74   : > { %1965 = vmatmul.mubr.msk.bf16.vlgmr.msra.gmra.mxu0 %vm291_vm1, %v1034_v3 }
 0xb34   : > { %v1966_v5 = vpop.f32.mrf.mxu0 }
 0xb35   : > { %v1091_v7 = vadd.f32 %v1966_v5, %v1813_v4 }
 0xb36   : > { %v1082_v8 = vpop.f32.mrf.mxu0 }
 0xb37   : > { %v2533_v10 = vpack.c.bf16 %v1091_v7, %v1091_v7  ;;  %v1083_v14 = vadd.f32 %v1813_v4, %v1082_v8 }
 0xb38   : > { %v1967_v12 = vpop.f32.mrf.mxu0 }
 0xb39   : > { %1205 = vrot.lane.b32.xlu1 %v2533_v10, %s2244_s7  ;;  %1102 = vrot.lane.b32.xlu0 %v2533_v10, %s2243_s6 }
 0xb3a   : > { %v1085_v13 = vpop.f32.mrf.mxu0 }
 0xb3b   : > { %v1086_v15 = vadd.f32 %v1813_v4, %v1085_v13 }
 0xb3d   : > { %v2539_v16 = vpack.c.bf16 %v1086_v15, %v1083_v14 }
 0xb3f   : > { %1199 = vrot.lane.b32.xlu0 %v2539_v16, %s2245_s8  ;;  %1100 = vrot.lane.b32.xlu1 %v2539_v16, %s2243_s6  ;;  %s161_s6 = sand.u32 1, %s2233_s13  }
 0xb40   : > { %1972 = vmatprep.mubr.msk.bf16.mxu1 %vm418_vm3, %v2539_v16  ;;  %s1707_s9 = scalar_lea.sflag [#allocation3], %s161_s6 }
 0xb43   : > { %1203 = vrot.lane.b32.xlu1 %v2539_v16, %s2244_s7  ;;  %s1835_s7 = sshll.u32 %s2292_s16, 4  ;;  %s2187_s16 = scalar_lea.vmem %s2186_s20, 32 }
 0xb44   : > { %s1717_s5 = scalar_lea.hbm %s2687_s3, %s1835_s7 }
 0xb47   : > { %1201 = vrot.lane.b32.xlu1 %v2533_v10, %s2245_s8  ;;  %s162_s8 = scalar_lea.vmem [#allocation2], %s161_s6 }
 0xbab   : > { %v1206_v18 = vpop.permute.xlu1 %1205  ;;  %v1103_v19 = vpop.permute.xlu0 %1102 }
 0xbac   : > { %v1217_v1 = vsel %vm418_vm3, %v1206_v18, 0  ;;  %v1114_v20 = vsel %vm418_vm3, %v1103_v19, 0  ;;  %2029 = vmatprep.subr.msk.bf16.mxu1 %vm418_vm3, %v1103_v19  ;;  %2031 = vmatprep.subr.msk.bf16.mxu0 %vm418_vm3, %v1206_v18 }
 0xbad   : > { %1969 = vmatpush3.bf16.xpose.msra.mxu1 %v1114_v20  ;;  %1977 = vmatpush3.bf16.xpose.msra.mxu0 %v1217_v1 }
 0xbb1   : > { %v1200_v23 = vpop.permute.xlu0 %1199  ;;  %v1101_v24 = vpop.permute.xlu1 %1100 }
 0xbb2   : > { %2030 = vmatprep.subr.msk.bf16.mxu1 %vm418_vm3, %v1101_v24  ;;  %1980 = vmatprep.mubr.msk.bf16.mxu0 %vm418_vm3, %v1200_v23  ;;  %v1111_v48 = vsel %vm418_vm3, %v1101_v24, 0 }
 0xbb5   : > { %1971 = vmatpush3.bf16.xpose.msra.mxu1 %v1111_v48  ;;  %v1204_v50 = vpop.permute.xlu1 %1203 }
 0xbb6   : > { %v1214_v26 = vsel %vm418_vm3, %v1204_v50, 0  ;;  %2032 = vmatprep.subr.msk.bf16.mxu0 %vm418_vm3, %v1204_v50 }
 0xbb7   : > { %1979 = vmatpush3.bf16.xpose.msra.mxu0 %v1214_v26 }
 0xbb9   : > { %v1202_v27 = vpop.permute.xlu1 %1201 }
 0xbbc   : > { %1973 = vmatmul.mubr.msk.bf16.vlgmr.msra.gmra.mxu1 %vm418_vm3, %v2533_v10 }
 0xbbe   : > { %1981 = vmatmul.mubr.msk.bf16.vlgmr.msra.gmra.mxu0 %vm418_vm3, %v1202_v27 }
 0xc7c   : > { %v1974_v28 = vpop.f32.mrf.mxu1 }
 0xc7d   : > { %v1159_v43 = vadd.f32 %v1974_v28, %v2412_v22 }
 0xc7e   : > { %v1150_v29 = vpop.f32.mrf.mxu1  ;;  %v1982_v53 = vpop.f32.mrf.mxu0 }
 0xc7f   : > { %v1151_v30 = vadd.f32 %v2412_v22, %v1150_v29  ;;  %v1262_v39 = vadd.f32 %v1982_v53, %v2412_v22  ;;  %v1170_v46 = vsel %vm479_vm4, %v1159_v43, -inf }
 0xc80   : > { %v1975_v31 = vpop.f32.mrf.mxu1  ;;  %v1253_v32 = vpop.f32.mrf.mxu0 }
 0xc81   : > { %v1254_v33 = vadd.f32 %v2412_v22, %v1253_v32  ;;  %v1164_v34 = vsel %vm479_vm4, %v1151_v30, -inf  ;;  %v1273_v44 = vsel %vm479_vm4, %v1262_v39, -inf }
 0xc82   : > { %v1153_v35 = vpop.f32.mrf.mxu1  ;;  %v1983_v36 = vpop.f32.mrf.mxu0  ;;  %1165 = vmax.xlane.f32.xlu0 %v1164_v34 }
 0xc83   : > { %v1154_v37 = vadd.f32 %v2412_v22, %v1153_v35  ;;  %v1267_v42 = vsel %vm479_vm4, %v1254_v33, -inf }
 0xc84   : > { %v1256_v38 = vpop.f32.mrf.mxu0 }
 0xc85   : > { %v1257_v40 = vadd.f32 %v2412_v22, %v1256_v38  ;;  %v1167_v41 = vsel %vm479_vm4, %v1154_v37, -inf }
 0xc86   : > { %1168 = vmax.xlane.f32.xlu1 %v1167_v41  ;;  %1268 = vmax.xlane.f32.xlu0 %v1267_v42 }
 0xc87   : > { %v1270_v45 = vsel %vm479_vm4, %v1257_v40, -inf }
 0xc8a   : > { %1274 = vmax.xlane.f32.xlu1 %v1273_v44  ;;  %1271 = vmax.xlane.f32.xlu0 %v1270_v45 }
 0xc8e   : > { %1171 = vmax.xlane.f32.xlu0 %v1170_v46 }
 0xd0b   : > { %v1166_v47 = vpop.xlane.xlu0 %1165 }
 0xd0c   : > { %v1173_v11 = vsub.f32 %v1151_v30, %v1166_v47 }
 0xd0e   : > { %v1176_v57 = vmul.f32 1.442695, %v1173_v11 }
 0xd0f   : > { %v1169_v49 = vpop.xlane.xlu1 %1168  ;;  %v1269_v51 = vpop.xlane.xlu0 %1268 }
 0xd10   : > { %v1276_v58 = vsub.f32 %v1254_v33, %v1269_v51  ;;  %v1174_v5 = vsub.f32 %v1154_v37, %v1169_v49 }
 0xd12   : > { %v1279_v60 = vmul.f32 1.442695, %v1276_v58  ;;  %v1178_v7 = vmul.f32 1.442695, %v1174_v5 }
 0xd13   : > { %v1275_v52 = vpop.xlane.xlu1 %1274  ;;  %v1272_v54 = vpop.xlane.xlu0 %1271 }
 0xd14   : > { %v1278_v55 = vsub.f32 %v1262_v39, %v1275_v52  ;;  %v1277_v8 = vsub.f32 %v1257_v40, %v1272_v54 }
 0xd16   : > { %v1283_v56 = vmul.f32 1.442695, %v1278_v55  ;;  %v1281_v12 = vmul.f32 1.442695, %v1277_v8 }
 0xd17   : > { %v1172_v9 = vpop.xlane.xlu0 %1171 }
 0xd18   : > { %2141 = vpow2.f32 %v1283_v56  ;;  %v1175_v22 = vsub.f32 %v1159_v43, %v1172_v9 }
 0xd1a   : > { %v1180_v59 = vmul.f32 1.442695, %v1175_v22 }
 0xd1c   : > { %2143 = vpow2.f32 %v1180_v59 }
 0xd1d   : > { %2145 = vpow2.f32 %v1176_v57 }
 0xd1e   : > { %2147 = vpow2.f32 %v1279_v60 }
 0xd1f   : > { %2149 = vpow2.f32 %v1178_v7 }
 0xd20   : > { %2151 = vpow2.f32 %v1281_v12 }
 0xd25   : > { %v2575_v61 = vpop.eup %2141 }
 0xd26   : > { %v1291_v17 = vsel %vm479_vm4, %v2575_v61, 0.0 }
 0xd27   : > { %1292 = vadd.xlane.f32.xlu1 %v1291_v17 }
 0xd29   : > { %v2144_v62 = vpop.eup %2143 }
 0xd2a   : > { %v1188_v63 = vsel %vm479_vm4, %v2144_v62, 0.0  ;;  %v2146_v0 = vpop.eup %2145 }
 0xd2b   : > { %1189 = vadd.xlane.f32.xlu0 %v1188_v63  ;;  %v1182_v2 = vsel %vm479_vm4, %v2146_v0, 0.0  ;;  %v2148_v3 = vpop.eup %2147 }
 0xd2c   : > { %v1285_v4 = vsel %vm479_vm4, %v2148_v3, 0.0  ;;  %v2150_v13 = vpop.eup %2149 }
 0xd2d   : > { %v1185_v14 = vsel %vm479_vm4, %v2150_v13, 0.0  ;;  %v2152_v15 = vpop.eup %2151 }
 0xd2e   : > { %v1288_v18 = vsel %vm479_vm4, %v2152_v15, 0.0 }
 0xd2f   : > { %1183 = vadd.xlane.f32.xlu0 %v1182_v2 }
 0xd33   : > { %1286 = vadd.xlane.f32.xlu0 %v1285_v4 }
 0xd38   : > { %1366 = vrot.lane.b32.xlu1 %v2533_v10, %s2247_s17 }
 0xd3c   : > { %1302 = vrot.lane.b32.xlu1 %v2539_v16, %s2246_s11 }
 0xd49   : > { %1304 = vrot.lane.b32.xlu0 %v2533_v10, %s2246_s11  ;;  %s1719_s11 = sshll.u32 %s162_s8, 4  ;;  %s1720_s11 = int_to_ptr.vmem [resolvable:$true] %s1719_s11 }
 0xd4a   : > { %s2181_s10 = scalar_lea.vmem %s1720_s11, 16  ;;  %p2188_p0 = scmp.lt.s32.totalorder %s1720_s11, %s2186_s20 }
 0xd4b   : > { %p2182_p11 = scmp.ne.s32.totalorder %s1720_s11, %s2181_s10  ;;  %p2189_p1 = scmp.lt.s32.totalorder %s2187_s16, %s2181_s10 }
 0xd4d   : > { %p2183_p12 = pnand %p2182_p11, %p2309_p5  ;;  %p2190_p2 = por %p2189_p1, %p2188_p0 }
 0xd4f   : > { %p2184_p13 = pneg %p2183_p12 }
 0xd51   : > { %p2191_p3 = pnand %p2190_p2, %p2184_p13 }
 0xd60   : > { %1186 = vadd.xlane.f32.xlu1 %v1185_v14 }
 0xd64   : > { %1289 = vadd.xlane.f32.xlu1 %v1288_v18 }
 0xd75   : > { %1364 = vrot.lane.b32.xlu1 %v2539_v16, %s2247_s17 }
 0xdb0   : > { %v1293_v19 = vpop.xlane.xlu1 %1292 }
 0xdb4   : > { %v1367_v1 = vpop.permute.xlu1 %1366  ;;  %v1190_v20 = vpop.xlane.xlu0 %1189 }
 0xdb5   : > { %v1376_v10 = vsel %vm358_vm2, %v1367_v1, 0  ;;  %2034 = vmatprep.subr.msk.bf16.mxu0 %vm358_vm2, %v1367_v1  ;;  %2153 = vrcp.f32 %v1190_v20 }
 0xdb6   : > { %1993 = vmatpush3.bf16.msra.mxu0 %v1376_v10 }
 0xdb8   : > { %v1184_v23 = vpop.xlane.xlu0 %1183  ;;  %v1303_v26 = vpop.permute.xlu1 %1302 }
 0xdb9   : > { %2155 = vrcp.f32 %v1184_v23 }
 0xdbc   : > { %v1287_v24 = vpop.xlane.xlu0 %1286 }
 0xdc0   : > { %v1305_v48 = vpop.permute.xlu0 %1304 }
 0xdc1   : > { %v1314_v50 = vsel %vm358_vm2, %v1305_v48, 0  ;;  %2033 = vmatprep.subr.msk.bf16.mxu1 %vm358_vm2, %v1305_v48 }
 0xdc2   : > { %1985 = vmatpush3.bf16.msra.mxu1 %v1314_v50  ;;  %v2154_v29 = vpop.eup %2153 }
 0xdc3   : > { %1986 = vmatprep.subr.bf16.mxu1 %v1303_v26  ;;  %v1196_v31 = vmul.f32 %v2154_v29, %v2144_v62 }
 0xdc5   : > { %v1198_v38 = vpack.c.bf16 %v1196_v31, %v1196_v31  ;;  %v1825_v31 = vld [vmem:[%s2686_s2 + $0x2e] ss:$0 sm:$0xff] }
 0xdc6   : > { %1987 = vmatpush3.bf16.msra.mxu1 %v1303_v26  ;;  %v2156_v53 = vpop.eup %2155 }
 0xdc7   : > { %v1194_v33 = vmul.f32 %v2156_v53, %v2146_v0 }
 0xde9   : > { %v1187_v16 = vpop.xlane.xlu1 %1186 }
 0xdea   : > { %2157 = vrcp.f32 %v1187_v16  ;;  %v1824_v16 = vld [vmem:[%s2686_s2 + $0x2d] ss:$0 sm:$0xff] }
 0xdeb   : > { %2159 = vrcp.f32 %v1293_v19 }
 0xdec   : > { %2161 = vrcp.f32 %v1287_v24 }
 0xded   : > { %v1290_v27 = vpop.xlane.xlu1 %1289 }
 0xdee   : > { %2163 = vrcp.f32 %v1290_v27 }
 0xdf1   : > { %v1365_v28 = vpop.permute.xlu1 %1364 }
 0xdf2   : > { %1994 = vmatprep.subr.bf16.mxu0 %v1365_v28 }
 0xdf3   : > { %1995 = vmatpush3.bf16.msra.mxu0 %v1365_v28 }
 0xdf7   : > { %v2158_v30 = vpop.eup %2157 }
 0xdf8   : > { %v2160_v32 = vpop.eup %2159  ;;  %v1195_v34 = vmul.f32 %v2158_v30, %v2150_v13  ;;  %v968_v13 = vld [vmem:[%s2685_s1 + $0x40] sm:$0xf] }
 0xdf9   : > { %v2162_v35 = vpop.eup %2161  ;;  %v1299_v39 = vmul.f32 %v2160_v32, %v2575_v61  ;;  %2035 = vmatprep.subr.msk.bf16.mxu1 %vm358_vm2, %v968_v13  ;;  %v1495_v14 = vsel %vm358_vm2, %v968_v13, 0 }
 0xdfa   : > { %v1197_v36 = vpack.c.bf16 %v1195_v34, %v1194_v33  ;;  %v1297_v40 = vmul.f32 %v2162_v35, %v2148_v3 }
 0xdfb   : > { %v2164_v37 = vpop.eup %2163  ;;  %v1301_v43 = vpack.c.bf16 %v1299_v39, %v1299_v39  ;;  %v2091_v39 = vld [vmem:[%s2685_s1 + $0x4c] sm:$0xff]  }
 0xdfc   : > { %1996 = vmatprep.mubr.msk.bf16.mxu0 %vm479_vm4, %v1197_v36  ;;  %v1298_v41 = vmul.f32 %v2164_v37, %v2152_v15  ;;  %2006 = vmatprep.subr.bf16.mxu0 %v2091_v39 }
 0xdfd   : > { %1997 = vmatmul.mubr.msk.bf16.vlgmr.msra.gmra.mxu0 %vm479_vm4, %v1198_v38 }
 0xdfe   : > { %v1300_v42 = vpack.c.bf16 %v1298_v41, %v1297_v40  ;;  %2007 = vmatpush3.bf16.msra.mxu0 %v2091_v39  ;;  %v2092_v40 = vld [vmem:[%s2685_s1 + $0x44] sm:$0xff]  }
 0xdff   : > { %2008 = vmatprep.subr.bf16.mxu0 %v2092_v40  ;;  %v1826_v41 = vld [vmem:[%s2686_s2 + $0x29] ss:$0 sm:$0xff] }
 0xe00   : > { %1988 = vmatprep.mubr.msk.bf16.mxu1 %vm479_vm4, %v1300_v42 }
 0xe01   : > { %1989 = vmatmul.mubr.msk.bf16.vlgmr.msra.gmra.mxu1 %vm479_vm4, %v1301_v43 }
 0xe02   : > { %2001 = vmatpush3.bf16.msra.mxu1 %v1495_v14  ;;  %2009 = vmatpush3.bf16.msra.mxu0 %v2092_v40 }
 0xebd   : > { %v1998_v44 = vpop.f32.mrf.mxu0 }
 0xebf   : > { %v1412_v45 = vpop.f32.mrf.mxu0 }
 0xec1   : > { %v1990_v46 = vpop.f32.mrf.mxu1  ;;  %v1999_v47 = vpop.f32.mrf.mxu0 }
 0xec2   : > { %v1421_v51 = vadd.f32 %v1998_v44, %v1990_v46 }
 0xec3   : > { %v1350_v49 = vpop.f32.mrf.mxu1  ;;  %v1415_v11 = vpop.f32.mrf.mxu0 }
 0xec4   : > { %v1413_v52 = vadd.f32 %v1412_v45, %v1350_v49  ;;  %v1428_v57 = vadd.f32 %v1421_v51, %v2500_v21 }
 0xec5   : > { %v1991_v54 = vpop.f32.mrf.mxu1 }
 0xec6   : > { %v2602_v55 = vadd.f32 %v1413_v52, %v2498_v6  ;;  %v1435_v59 = vsel %vm291_vm1, %v1428_v57, 0.0 }
 0xec7   : > { %v1353_v56 = vpop.f32.mrf.mxu1 }
 0xec8   : > { %v1416_v9 = vadd.f32 %v1415_v11, %v1353_v56  ;;  %v1429_v22 = vsel %vm291_vm1, %v2602_v55, 0.0 }
 0xec9   : > { %1430 = vadd.xlane.f32.xlu0 %v1429_v22 }
 0xeca   : > { %v1427_v58 = vadd.f32 %v1416_v9, %v2505_v25 }
 0xecc   : > { %v1432_v60 = vsel %vm291_vm1, %v1427_v58, 0.0 }
 0xecd   : > { %1436 = vadd.xlane.f32.xlu0 %v1435_v59  ;;  %1433 = vadd.xlane.f32.xlu1 %v1432_v60 }
 0xf52   : > { %v1431_v61 = vpop.xlane.xlu0 %1430 }
 0xf53   : > { %v1438_v6 = vmul.f32 0.125, %v1431_v61 }
 0xf55   : > { %v1441_v17 = vsub.f32 %v2602_v55, %v1438_v6 }
 0xf56   : > { %v1437_v62 = vpop.xlane.xlu0 %1436  ;;  %v1434_v63 = vpop.xlane.xlu1 %1433 }
 0xf57   : > { %v1440_v0 = vmul.f32 0.125, %v1437_v62  ;;  %v1439_v2 = vmul.f32 0.125, %v1434_v63  ;;  %v1444_v3 = vmul.f32 %v1441_v17, %v1441_v17 }
 0xf59   : > { %v1443_v4 = vsub.f32 %v1428_v57, %v1440_v0  ;;  %v1442_v21 = vsub.f32 %v1427_v58, %v1439_v2  ;;  %v1447_v5 = vsel %vm291_vm1, %v1444_v3, 0.0 }
 0xf5a   : > { %1448 = vadd.xlane.f32.xlu0 %v1447_v5 }
 0xf5b   : > { %v1446_v25 = vmul.f32 %v1443_v4, %v1443_v4  ;;  %v1445_v7 = vmul.f32 %v1442_v21, %v1442_v21 }
 0xf5d   : > { %v1453_v8 = vsel %vm291_vm1, %v1446_v25, 0.0  ;;  %v1450_v12 = vsel %vm291_vm1, %v1445_v7, 0.0 }
 0xf5e   : > { %1454 = vadd.xlane.f32.xlu1 %v1453_v8  ;;  %1451 = vadd.xlane.f32.xlu0 %v1450_v12 }
 0xfe3   : > { %v1449_v15 = vpop.xlane.xlu0 %1448 }
 0xfe4   : > { %v1456_v18 = vmul.f32 0.125, %v1449_v15 }
 0xfe6   : > { %v1459_v19 = vadd.f32 1e-05, %v1456_v18  ;;  %v1644_v18 = vld [vmem:[%s2685_s1 + $0x20] sm:$0xf] }
 0xfe7   : > { %v1452_v1 = vpop.xlane.xlu0 %1451  ;;  %v1455_v20 = vpop.xlane.xlu1 %1454 }
 0xfe8   : > { %2165 = vrsqrt.f32 %v1459_v19  ;;  %v1457_v10 = vmul.f32 0.125, %v1452_v1  ;;  %v1458_v23 = vmul.f32 0.125, %v1455_v20  ;;  %v2248_v19 = vmov 0.0  }
 0xfe9   : > { %2014 = vmatprep.subr.bf16.mxu1 %v2248_v19  ;;  %v1651_v1 = vsel %vm358_vm2, %v1644_v18, 0 }
 0xfea   : > { %v1460_v24 = vadd.f32 1e-05, %v1457_v10  ;;  %v1461_v48 = vadd.f32 1e-05, %v1458_v23  ;;  %v1833_v10 = vld [vmem:[%s2686_s2 + $0x2a] ss:$0 sm:$0xff] }
 0xfec   : > { %2167 = vrsqrt.f32 %v1460_v24 }
 0xfed   : > { %2169 = vrsqrt.f32 %v1461_v48 }
 0xff5   : > { %v2166_v50 = vpop.eup %2165 }
 0xff6   : > { %v1465_v26 = vmul.f32 %v2166_v50, %v1441_v17 }
 0xff8   : > { %v1472_v53 = vmul.f32 %v1824_v16, %v1465_v26 }
 0xff9   : > { %v2168_v27 = vpop.eup %2167 }
 0xffa   : > { %v2170_v28 = vpop.eup %2169  ;;  %v1466_v29 = vmul.f32 %v2168_v27, %v1442_v21  ;;  %v1479_v34 = vadd.f32 %v1825_v31, %v1472_v53  ;;  %v1645_v27 = vld [vmem:[%s2686_s2 + $0x19] sm:$0x1] }
 0xffb   : > { %v1467_v30 = vmul.f32 %v2170_v28, %v1443_v4 }
 0xffc   : > { %v1473_v32 = vmul.f32 %v1824_v16, %v1466_v29 }
 0xffd   : > { %v1474_v33 = vmul.f32 %v1824_v16, %v1467_v30 }
 0xffe   : > { %v1480_v35 = vadd.f32 %v1825_v31, %v1473_v32 }
 0xfff   : > { %v1481_v36 = vadd.f32 %v1825_v31, %v1474_v33 }
0x1000   : > { %v1482_v37 = vpack.c.bf16 %v1480_v35, %v1479_v34 }
0x1001   : > { %v1483_v38 = vpack.c.bf16 %v1481_v36, %v1481_v36 }
0x1002   : > { %2002 = vmatprep.mubr.msk.bf16.mxu1 %vm291_vm1, %v1482_v37 }
0x1003   : > { %2003 = vmatmul.mubr.msk.bf16.vlgmr.msra.gmra.mxu1 %vm291_vm1, %v1483_v38 }
0x1004   : > { %2015 = vmatpush3.bf16.msra.mxu1 %v1651_v1  ;;  %2016 = vmatprep.mubr.msk.bf16.mxu1 %vm2249_vm6, %v2248_v19 }
0x10c3   : > { %v2004_v42 = vpop.f32.mrf.mxu1 }
0x10c4   : > { %v1540_v43 = vadd.f32 %v2004_v42, %v1826_v41 }
0x10c5   : > { %v1531_v44 = vpop.f32.mrf.mxu1 }
0x10c6   : > { %v1547_v45 = vmul.f32 %v1540_v43, %v1540_v43  ;;  %v1532_v46 = vadd.f32 %v1826_v41, %v1531_v44 }
0x10c7   : > { %v2005_v47 = vpop.f32.mrf.mxu1 }
0x10c8   : > { %v1550_v49 = vmul.f32 %v1547_v45, %v1540_v43  ;;  %v1545_v51 = vmul.f32 %v1532_v46, %v1532_v46 }
0x10c9   : > { %v1534_v52 = vpop.f32.mrf.mxu1 }
0x10ca   : > { %v1553_v54 = vmul.f32 0.044715, %v1550_v49  ;;  %v1548_v11 = vmul.f32 %v1545_v51, %v1532_v46  ;;  %v1535_v56 = vadd.f32 %v1826_v41, %v1534_v52 }
0x10cc   : > { %v1556_v9 = vadd.f32 %v1553_v54, %v1540_v43  ;;  %v1551_v22 = vmul.f32 0.044715, %v1548_v11  ;;  %v1546_v57 = vmul.f32 %v1535_v56, %v1535_v56 }
0x10ce   : > { %v1559_v58 = vmul.f32 0.7978846, %v1556_v9  ;;  %v1554_v59 = vadd.f32 %v1551_v22, %v1532_v46  ;;  %v1549_v60 = vmul.f32 %v1546_v57, %v1535_v56 }
0x10d0   : > { %2171 = vtanh.f32 %v1559_v58  ;;  %v1557_v61 = vmul.f32 0.7978846, %v1554_v59  ;;  %v1552_v6 = vmul.f32 0.044715, %v1549_v60 }
0x10d2   : > { %2173 = vtanh.f32 %v1557_v61  ;;  %v1555_v17 = vadd.f32 %v1552_v6, %v1535_v56 }
0x10d4   : > { %v1558_v62 = vmul.f32 0.7978846, %v1555_v17 }
0x10d6   : > { %2175 = vtanh.f32 %v1558_v62 }
0x10dd   : > { %v2172_v63 = vpop.eup %2171 }
0x10de   : > { %v1565_v2 = vadd.f32 1.0, %v2172_v63 }
0x10df   : > { %v2174_v0 = vpop.eup %2173 }
0x10e0   : > { %v1563_v3 = vadd.f32 1.0, %v2174_v0  ;;  %v1568_v21 = vmul.f32 0.5, %v1565_v2 }
0x10e2   : > { %v1566_v5 = vmul.f32 0.5, %v1563_v3  ;;  %v1571_v8 = vmul.f32 %v1568_v21, %v1540_v43 }
0x10e3   : > { %v2176_v4 = vpop.eup %2175 }
0x10e4   : > { %v1564_v25 = vadd.f32 1.0, %v2176_v4  ;;  %v1569_v12 = vmul.f32 %v1566_v5, %v1532_v46  ;;  %v1573_v15 = vpack.c.bf16 %v1571_v8, %v1571_v8 }
0x10e6   : > { %v1567_v7 = vmul.f32 0.5, %v1564_v25 }
0x10e8   : > { %v1570_v13 = vmul.f32 %v1567_v7, %v1535_v56 }
0x10ea   : > { %v1572_v14 = vpack.c.bf16 %v1570_v13, %v1569_v12 }
0x10ec   : > { %2010 = vmatprep.mubr.msk.bf16.mxu0 %vm902_vm5, %v1572_v14 }
0x10ed   : > { %2011 = vmatmul.mubr.msk.bf16.vlgmr.msra.gmra.mxu0 %vm902_vm5, %v1573_v15 }
0x11ad   : > { %v2012_v20 = vpop.f32.mrf.mxu0 }
0x11af   : > { %v1626_v23 = vpop.f32.mrf.mxu0 }
0x11b0   : > { %v1638_v24 = vadd.f32 %v1626_v23, %v2602_v55 }
0x11b1   : > { %v2013_v48 = vpop.f32.mrf.mxu0 }
0x11b2   : > { %v1643_v50 = vadd.f32 %v1833_v10, %v1638_v24 }
0x11b3   : > { %v1629_v26 = vpop.f32.mrf.mxu0 }
0x11b4   : > { %v1646_v16 = vpack.c.bf16 %v1643_v50, %v1643_v50 }
0x11b6   : > { %2017 = vmatmul.mubr.msk.bf16.vlgmr.msra.gmra.mxu1 %vm291_vm1, %v1646_v16 }
0x1276   : > { %v1687_v28 = vpop.f32.mrf.mxu1 }
0x1277   : > { %v1688_v29 = vadd.f32 %v1687_v28, %v1645_v27 }
0x1278   : > { %v2018_v53 = vpop.f32.mrf.mxu1 }
0x1279   : > { %v1694_v30 = vsel %vm1693_vm7, %v1688_v29, -inf }
0x127a   : > { %1695 = vmax.xlane.f32.xlu0 %v1694_v30  ;;  %v1690_v31 = vpop.f32.mrf.mxu1 }
0x127c   : > { %v2019_v55 = vpop.f32.mrf.mxu1 }
0x1303   : > { %v1696_v32 = vpop.xlane.xlu0 %1695 }
0x1304   : > { %v1697_v33 = vsub.f32 %v1688_v29, %v1696_v32 }
0x1306   : > { %v1698_v34 = vmul.f32 1.442695, %v1697_v33 }
0x1308   : > { %2177 = vpow2.f32 %v1698_v34 }
0x1315   : > { %v2178_v35 = vpop.eup %2177 }
0x1316   : > { %v1700_v36 = vsel %vm1693_vm7, %v2178_v35, 0.0 }
0x1317   : > { %1701 = vadd.xlane.f32.xlu1 %v1700_v36 }
0x13a0   : > { %v1702_v37 = vpop.xlane.xlu1 %1701 }
0x13a1   : > { %2179 = vrcp.f32 %v1702_v37 }
0x13ae   : > { %v2180_v38 = vpop.eup %2179 }
0x13af   : > { %v1704_v39 = vmul.f32 %v2180_v38, %v2178_v35 }
0x13b1   : > { %1705 = vst [vmem:[%s162_s8] sm:$0x1] %v1704_v39 }
0x13b2   : > { %2194 = shalt.err (!%p2191_p3)
}
0x13b3   : > { %s2195_s24 = scalar_lea.hbm %s1717_s5, 16  ;;  %s2199_s27 = scalar_lea.hbm %s2687_s3, 32 }
0x13b4   : > { %p2196_p4 = scmp.ne.s32.totalorder %s1717_s5, %s2195_s24  ;;  %p2200_p9 = scmp.lt.s32.totalorder %s1717_s5, %s2687_s3 }
0x13b5   : > { %p2201_p10 = scmp.lt.s32.totalorder %s2199_s27, %s2195_s24 }
0x13b6   : > { %p2197_p7 = pnand %p2196_p4, %p2309_p5 }
0x13b7   : > { %p2202_p11 = por %p2201_p10, %p2200_p9 }
0x13b8   : > { %p2198_p8 = pneg %p2197_p7 }
0x13ba   : > { %p2203_p12 = pnand %p2202_p11, %p2198_p8 }
0x13bc   : > { %2206 = shalt.err (!%p2203_p12)
}
0x13bd   : > { %2037 = dma.vmem_to_hbm [thread:$0]  (%p2309_p5), %s1720_s11, 16, %s1717_s5, %s1707_s9  }
0x13be PF: > { %p2043_p13 = scmp.ge.s32.totalorder %s2241_s15, 2  ;;  %s1731_s30 = sand.u32 1, %s2229_s12  }
0x13bf   : > { %s1732_s6 = scalar_lea.sflag [#allocation3], %s1731_s30 }
0x13c0   : > { %p2040_p0 = pnand %p2043_p13, %p2313_p6 }
0x13c2   : > { %p2041_p1 = pneg %p2040_p0 }
0x13c4   : > { %2224 = dma.done.wait (%p2041_p1), %s1732_s6, 16  }
0x13c5   : > { %2226 = vsyncadd (%p2041_p1), %s1732_s6, 4294967280  ;;  %p13_p2 = scmp.ge.s32.totalorder %s2296_s18, 4   ;;  %s2690_s12 = smov %s2233_s13 }
0x13c6   : > { %s2691_s13 = smov %s2237_s14  ;;  %s2692_s14 = smov %s2307_s21 }
0x13c7   : > { %s2693_s15 = smov %s2296_s18  ;;  %15 = sbr.rel (!%p13_p2) target bundleno = 3 (0x3), region = 67 }
0x13cc   :  { %1736 = vsyncpa [#allocation3], 1 }
0x13cd   :  { %1738 = vsyncpa [#allocation3 + $0x1], 1 }

</bundles_post_ra>
